<compile_context>
chip_gen: v6e
topology: v6e:2x2x1
jax: 0.10.0
libtpu: 0.0.40
codegen_flags: <defaults>
</compile_context>

<pallas_src>
import jax
import jax.numpy as jnp
import numpy as np
from jax.experimental import pallas as pl
from jax.experimental.pallas import tpu as pltpu

HIDDEN = 128     # stands in for 512 in the reference module (scaled for small test)
OUT_CH = 1
KSIZE = 4
BN_EPS = 1e-5
NPAR = 4         # branch-2 output-parity classes (oh%2, ow%2)


# --------------------------------------------------------------------------- #
# Pallas kernel: one fused matmul + BN(train, folded affine) + ReLU + parity
# select + tanh + broadcast add.  Single grid point, everything VMEM-resident.
# --------------------------------------------------------------------------- #
def generator_kernel(p_ref, w_ref, q_ref, gamma_ref, beta_ref, o_ref):
    # Single MXU dot (bf16 operands, f32 accumulation):
    #   cols 0:HIDDEN        -> branch-1 pre-BN activations   (ConvT k4 s1 p0)
    #   cols HIDDEN:HIDDEN+4 -> branch-2 output per parity cls (ConvT k4 s2 p1)
    fused = jnp.dot(p_ref[...], w_ref[...], preferred_element_type=jnp.float32)

    # --- branch 1: BatchNorm2d (training mode) folded into scale/shift ------
    y1 = fused[:, 0:HIDDEN]                                     # [m, 128] f32
    inv_m = 1.0 / y1.shape[0]                                   # compile-time const
    mean = jnp.sum(y1, axis=0, keepdims=True) * inv_m           # [1, 128]
    msq = jnp.sum(y1 * y1, axis=0, keepdims=True) * inv_m       # [1, 128]
    var = jnp.maximum(msq - mean * mean, 0.0)                   # biased var
    scale = gamma_ref[...] * jax.lax.rsqrt(var + BN_EPS)        # rsqrt -> EUP
    shift = beta_ref[...] - mean * scale
    main = jnp.maximum(y1 * scale + shift, 0.0)                 # ReLU

    # --- branch 2: pick this row's parity column, tanh, broadcast-add -------
    q = q_ref[...]                                              # [m, 1] int32
    c0 = fused[:, HIDDEN + 0:HIDDEN + 1]
    c1 = fused[:, HIDDEN + 1:HIDDEN + 2]
    c2 = fused[:, HIDDEN + 2:HIDDEN + 3]
    c3 = fused[:, HIDDEN + 3:HIDDEN + 4]
    y2 = jnp.where(q == 0, c0,
                   jnp.where(q == 1, c1,
                             jnp.where(q == 2, c2, c3)))        # [m, 1]
    o_ref[...] = (main + jnp.tanh(y2)).astype(o_ref.dtype)      # lane broadcast


# --------------------------------------------------------------------------- #
# Plain-JAX glue: im2col lowering of the two transposed convolutions.
# --------------------------------------------------------------------------- #
def _branch1_patches(x_nchw):
    """im2col for ConvTranspose2d(k=4, s=1, p=0): rows = (n, oh, ow), cols = (kh, kw, c)."""
    n, c, h, w = x_nchw.shape
    x = jnp.transpose(x_nchw, (0, 2, 3, 1))                     # NHWC
    pad = KSIZE - 1
    xp = jnp.pad(x, ((0, 0), (pad, pad), (pad, pad), (0, 0)))
    oh, ow = h + KSIZE - 1, w + KSIZE - 1
    cols = [xp[:, kh:kh + oh, kw:kw + ow, :]
            for kh in range(KSIZE) for kw in range(KSIZE)]
    p = jnp.stack(cols, axis=3)                                 # [N, OH, OW, 16, C]
    return p.reshape(n * oh * ow, KSIZE * KSIZE * c), (n, oh, ow)


def _branch1_wmat(w_iohw):
    """PyTorch ConvTranspose2d weight [C_in, C_out, kh, kw] -> [16*C_in, C_out]
    (spatially flipped, ordering consistent with _branch1_patches)."""
    wf = w_iohw[:, :, ::-1, ::-1]
    return jnp.transpose(wf, (2, 3, 0, 1)).reshape(
        KSIZE * KSIZE * w_iohw.shape[0], w_iohw.shape[1])


def _branch2_trimmed_patches(x_nchw):
    """ConvTranspose2d(k=4, s=2, p=1): out[oh] = sum_t x[ih_t] * w[kh_t] with
       ih_t = (oh+1)//2 - t,  kh_t = (1 - oh%2) + 2*t,  t in {0,1}  (same in w).
    Only these 2x2 taps are non-zero, so the contraction dim is 4*C (not 16*C).
    Rows = (n, oh, ow), cols = (t_h, t_w, c); out-of-range taps read a zero halo."""
    n, c, h, w = x_nchw.shape
    oh, ow = 2 * h, 2 * w
    x = jnp.transpose(x_nchw, (0, 2, 3, 1))                     # NHWC
    xp = jnp.pad(x, ((0, 0), (1, 1), (1, 1), (0, 0)))           # zero halo
    ih_base = (np.arange(oh) + 1) // 2 + 1                      # +1: padded coords
    iw_base = (np.arange(ow) + 1) // 2 + 1
    blocks = []
    for th in range(2):
        g_h = jnp.take(xp, jnp.asarray(ih_base - th), axis=1)   # [N, OH, W+2, C]
        for tw in range(2):
            g = jnp.take(g_h, jnp.asarray(iw_base - tw), axis=2)  # [N, OH, OW, C]
            blocks.append(g)
    p = jnp.stack(blocks, axis=3)                               # [N, OH, OW, 4, C]
    return p.reshape(n * oh * ow, 4 * c)


def _branch2_trimmed_wmat(w2):
    """w2: [C_in, 1, 4, 4].  Column q = 2*ph + pw holds the tap weights used by
    output pixels with parity (oh%2, ow%2) = (ph, pw):  kh = (1-ph)+2*t_h, etc."""
    cols = []
    for ph in range(2):
        for pw in range(2):
            taps = []
            for th in range(2):
                for tw in range(2):
                    taps.append(w2[:, 0, (1 - ph) + 2 * th, (1 - pw) + 2 * tw])
            cols.append(jnp.concatenate(taps, axis=0))          # [4*C]
    return jnp.stack(cols, axis=1)                              # [4*C, 4]


@jax.jit
def generator_forward(x_nchw, w1, w2, gamma, beta):
    n = x_nchw.shape[0]
    p1, (_, oh, ow) = _branch1_patches(x_nchw)                  # [m, 16*C]
    p2t = _branch2_trimmed_patches(x_nchw)                      # [m, 4*C]
    wm1 = _branch1_wmat(w1)                                     # [16*C, HIDDEN]
    wm2t = _branch2_trimmed_wmat(w2)                            # [4*C, 4]
    m = n * oh * ow
    k1, k2 = p1.shape[1], p2t.shape[1]

    # Fused operands: one bf16 matmul, block weight [k1+k2, HIDDEN+4].
    p_cat = jnp.concatenate([p1, p2t], axis=1).astype(jnp.bfloat16)
    w_cat = jnp.zeros((k1 + k2, HIDDEN + NPAR), jnp.float32)
    w_cat = w_cat.at[:k1, :HIDDEN].set(wm1)
    w_cat = w_cat.at[k1:, HIDDEN:].set(wm2t)
    w_cat = w_cat.astype(jnp.bfloat16)

    # Per-row parity class q = 2*(oh%2) + (ow%2) -> selects branch-2 column.
    q = (2 * (jnp.arange(oh) % 2)[:, None] + (jnp.arange(ow) % 2)[None, :])
    q = jnp.tile(q[None].astype(jnp.int32), (n, 1, 1)).reshape(m, 1)

    vmem = pl.BlockSpec(memory_space=pltpu.MemorySpace.VMEM)
    out_flat = pl.pallas_call(
        generator_kernel,
        out_shape=jax.ShapeDtypeStruct((m, HIDDEN), jnp.float32),   # lane-dense
        in_specs=[vmem] * 5,
        out_specs=vmem,
    )(p_cat, w_cat, q,
      gamma.reshape(1, HIDDEN).astype(jnp.float32),
      beta.reshape(1, HIDDEN).astype(jnp.float32))

    # back to NCHW (module contract)
    return jnp.transpose(out_flat.reshape(n, oh, ow, HIDDEN), (0, 3, 1, 2))


# --------------------------------------------------------------------------- #
# Pure-JAX reference (sanity check of the kernel wiring).
# --------------------------------------------------------------------------- #
def _conv_transpose_ref(x, w_iohw, stride, padding):
    k = w_iohw.shape[-1]
    w_oihw = jnp.transpose(w_iohw[:, :, ::-1, ::-1], (1, 0, 2, 3))
    return jax.lax.conv_general_dilated(
        x, w_oihw, window_strides=(1, 1),
        padding=[(k - 1 - padding,) * 2] * 2,
        lhs_dilation=(stride, stride),
        dimension_numbers=("NCHW", "OIHW", "NCHW"),
        precision=jax.lax.Precision.HIGHEST)


def generator_reference(x, w1, w2, gamma, beta):
    y1 = _conv_transpose_ref(x, w1, stride=1, padding=0)
    mean = jnp.mean(y1, axis=(0, 2, 3), keepdims=True)
    var = jnp.var(y1, axis=(0, 2, 3), keepdims=True)            # biased (train mode)
    y1 = (y1 - mean) / jnp.sqrt(var + BN_EPS)
    y1 = y1 * gamma[None, :, None, None] + beta[None, :, None, None]
    main = jnp.maximum(y1, 0.0)
    y2 = jnp.tanh(_conv_transpose_ref(x, w2, stride=2, padding=1))
    return main + y2


if __name__ == "__main__":
    key = jax.random.PRNGKey(0)
    kx, kw1, kw2 = jax.random.split(key, 3)

    N, H, W = 2, 3, 3                                # 3x3 input is required (see note)
    x = jax.random.normal(kx, (N, HIDDEN, H, W), jnp.float32)
    # ConvTranspose2d weights, PyTorch layout [C_in, C_out, kH, kW], bias=False
    w1 = 0.05 * jax.random.normal(kw1, (HIDDEN, HIDDEN, KSIZE, KSIZE), jnp.float32)
    w2 = 0.05 * jax.random.normal(kw2, (HIDDEN, OUT_CH, KSIZE, KSIZE), jnp.float32)
    gamma = jnp.ones((HIDDEN,), jnp.float32)         # BatchNorm2d weight init
    beta = jnp.zeros((HIDDEN,), jnp.float32)         # BatchNorm2d bias init

    out = jax.block_until_ready(generator_forward(x, w1, w2, gamma, beta))
    assert out.shape == (N, HIDDEN, 2 * H, 2 * W), out.shape

    ref = generator_reference(x, w1, w2, gamma, beta)
    # bf16 MXU operands (f32 accumulation) vs. a HIGHEST-precision f32 reference.
    np.testing.assert_allclose(np.asarray(out), np.asarray(ref), atol=8e-2, rtol=8e-2)

    print("KERNEL_OK")
</pallas_src>

<mosaic_0001>
module attributes {stable_mosaic.version = 11 : i64} {
  func.func @generator_kernel(%arg0: memref<72x2560xbf16, #tpu.memory_space<vmem>>, %arg1: memref<2560x132xbf16, #tpu.memory_space<vmem>>, %arg2: memref<72x1xi32, #tpu.memory_space<vmem>>, %arg3: memref<1x128xf32, #tpu.memory_space<vmem>>, %arg4: memref<1x128xf32, #tpu.memory_space<vmem>>, %arg5: memref<72x128xf32, #tpu.memory_space<vmem>>) attributes {dimension_semantics = [], scalar_prefetch = 0 : i64, scratch_operands = 0 : i64, tpu.core_type = #tpu.core_type<tc>} {
    %c0 = arith.constant 0 : index
    %c0_0 = arith.constant 0 : index
    %0 = vector.load %arg0[%c0, %c0_0] : memref<72x2560xbf16, #tpu.memory_space<vmem>>, vector<72x2560xbf16>
    %c0_1 = arith.constant 0 : index
    %c0_2 = arith.constant 0 : index
    %1 = vector.load %arg1[%c0_1, %c0_2] : memref<2560x132xbf16, #tpu.memory_space<vmem>>, vector<2560x132xbf16>
    %cst = arith.constant dense<0.000000e+00> : vector<72x132xf32>
    %2 = tpu.matmul %0, %1, %cst {dimension_numbers = #tpu.dot_dimension_numbers<[1], [0], [0], [1], [0, 0, 1, 1], [], []>} : vector<72x2560xbf16>, vector<2560x132xbf16>, vector<72x132xf32> -> vector<72x132xf32>
    %3 = vector.extract_strided_slice %2 {offsets = [0, 0], sizes = [72, 128], strides = [1, 1]} : vector<72x132xf32> to vector<72x128xf32>
    %cst_3 = arith.constant dense<0.000000e+00> : vector<128xf32>
    %4 = vector.multi_reduction <add>, %3, %cst_3 [0] : vector<72x128xf32> to vector<128xf32>
    %5 = vector.shape_cast %4 : vector<128xf32> to vector<1x128xf32>
    %cst_4 = arith.constant 0.013888889 : f32
    %6 = vector.broadcast %cst_4 : f32 to vector<1x128xf32>
    %7 = arith.mulf %5, %6 : vector<1x128xf32>
    %8 = arith.mulf %3, %3 : vector<72x128xf32>
    %cst_5 = arith.constant dense<0.000000e+00> : vector<128xf32>
    %9 = vector.multi_reduction <add>, %8, %cst_5 [0] : vector<72x128xf32> to vector<128xf32>
    %10 = vector.shape_cast %9 : vector<128xf32> to vector<1x128xf32>
    %cst_6 = arith.constant 0.013888889 : f32
    %11 = vector.broadcast %cst_6 : f32 to vector<1x128xf32>
    %12 = arith.mulf %10, %11 : vector<1x128xf32>
    %13 = arith.mulf %7, %7 : vector<1x128xf32>
    %14 = arith.subf %12, %13 : vector<1x128xf32>
    %cst_7 = arith.constant 0.000000e+00 : f32
    %15 = vector.broadcast %cst_7 : f32 to vector<1x128xf32>
    %16 = arith.maximumf %14, %15 : vector<1x128xf32>
    %c0_8 = arith.constant 0 : index
    %c0_9 = arith.constant 0 : index
    %17 = vector.load %arg3[%c0_8, %c0_9] : memref<1x128xf32, #tpu.memory_space<vmem>>, vector<1x128xf32>
    %cst_10 = arith.constant 9.99999974E-6 : f32
    %18 = vector.broadcast %cst_10 : f32 to vector<1x128xf32>
    %19 = arith.addf %16, %18 : vector<1x128xf32>
    %20 = math.rsqrt %19 : vector<1x128xf32>
    %21 = arith.mulf %17, %20 : vector<1x128xf32>
    %c0_11 = arith.constant 0 : index
    %c0_12 = arith.constant 0 : index
    %22 = vector.load %arg4[%c0_11, %c0_12] : memref<1x128xf32, #tpu.memory_space<vmem>>, vector<1x128xf32>
    %23 = arith.mulf %7, %21 : vector<1x128xf32>
    %24 = arith.subf %22, %23 : vector<1x128xf32>
    %25 = vector.broadcast %21 : vector<1x128xf32> to vector<72x128xf32>
    %26 = arith.mulf %3, %25 : vector<72x128xf32>
    %27 = vector.broadcast %24 : vector<1x128xf32> to vector<72x128xf32>
    %28 = arith.addf %26, %27 : vector<72x128xf32>
    %cst_13 = arith.constant 0.000000e+00 : f32
    %29 = vector.broadcast %cst_13 : f32 to vector<72x128xf32>
    %30 = arith.maximumf %28, %29 : vector<72x128xf32>
    %c0_14 = arith.constant 0 : index
    %c0_15 = arith.constant 0 : index
    %31 = vector.load %arg2[%c0_14, %c0_15] : memref<72x1xi32, #tpu.memory_space<vmem>>, vector<72x1xi32>
    %32 = vector.extract_strided_slice %2 {offsets = [0, 128], sizes = [72, 1], strides = [1, 1]} : vector<72x132xf32> to vector<72x1xf32>
    %33 = vector.extract_strided_slice %2 {offsets = [0, 129], sizes = [72, 1], strides = [1, 1]} : vector<72x132xf32> to vector<72x1xf32>
    %34 = vector.extract_strided_slice %2 {offsets = [0, 130], sizes = [72, 1], strides = [1, 1]} : vector<72x132xf32> to vector<72x1xf32>
    %35 = vector.extract_strided_slice %2 {offsets = [0, 131], sizes = [72, 1], strides = [1, 1]} : vector<72x132xf32> to vector<72x1xf32>
    %c0_i32 = arith.constant 0 : i32
    %36 = vector.broadcast %c0_i32 : i32 to vector<72x1xi32>
    %37 = arith.cmpi eq, %31, %36 : vector<72x1xi32>
    %c1_i32 = arith.constant 1 : i32
    %38 = vector.broadcast %c1_i32 : i32 to vector<72x1xi32>
    %39 = arith.cmpi eq, %31, %38 : vector<72x1xi32>
    %c2_i32 = arith.constant 2 : i32
    %40 = vector.broadcast %c2_i32 : i32 to vector<72x1xi32>
    %41 = arith.cmpi eq, %31, %40 : vector<72x1xi32>
    %42 = arith.select %41, %34, %35 : vector<72x1xi1>, vector<72x1xf32>
    %43 = arith.select %39, %33, %42 : vector<72x1xi1>, vector<72x1xf32>
    %44 = arith.select %37, %32, %43 : vector<72x1xi1>, vector<72x1xf32>
    %45 = math.tanh %44 : vector<72x1xf32>
    %46 = vector.broadcast %45 : vector<72x1xf32> to vector<72x128xf32>
    %47 = arith.addf %30, %46 : vector<72x128xf32>
    %c0_16 = arith.constant 0 : index
    %c0_17 = arith.constant 0 : index
    %48 = vector.load %arg5[%c0_16, %c0_17] : memref<72x128xf32, #tpu.memory_space<vmem>>, vector<72x128xf32>
    tpu.vector_store %arg5[%c0_16, %c0_17], %47 {strides = array<i32>} : memref<72x128xf32, #tpu.memory_space<vmem>>, vector<72x128xf32>,
    return
  }
}

</mosaic_0001>

<bundles_post_ra>
// kernel: tile.6
= control target key start
LH: loop header
LB: loop body
LE: loop exit
PB: predicated region body
PF: predicated region fallthrough
CT: control target
= control target key end

     0   :  { %s28_s0 = inlined_call_operand.vmem [shape: s32[6,6], index: 0, kind: input, shape index: {}]   ;;  %s29_s1 = inlined_call_operand.vmem [shape: s32[2,1,1,6,1,6], index: 1, kind: output, shape index: {}]  }
   0x1   :  { %v4_v0 = vld [vmem:[%s28_s0] sm:$0x3f] }
   0x2   :  { %5 = vst [vmem:[%s29_s1] sm:$0xff] %v4_v0  ;;  %8 = vst [vmem:[%s29_s1 + $0x8] sm:$0xff] %v4_v0 }

// kernel: tile.0
= control target key start
LH: loop header
LB: loop body
LE: loop exit
PB: predicated region body
PF: predicated region fallthrough
CT: control target
= control target key end

     0   :  { %s151_s10 = smov 126   ;;  %vm3_vm0 = vcmask 7168   ;;  %s152_s11 = smov 127   ;;  %s310_s0 = inlined_call_operand.vmem [shape: s32[2,1,1,6,1,6], index: 0, kind: input, shape index: {}]   ;;  %s311_s1 = inlined_call_operand.vmem [shape: s32[72,1], index: 1, kind: output, shape index: {}]  }
   0x1   :  { %v31_v0 = vld.sshfl [vmem:[%s310_s0] sm:$0xff pattern:$0xa2918d05]   ;;  %v124_v4 = vld.sshfl [vmem:[%s310_s0 + $0x3] sm:$0xff pattern:$0x99999180]  }
   0x2   :  { %v10_v1 = vld.sshfl [vmem:[%s310_s0] sm:$0xff pattern:$0x3a2918d0]   ;;  %32 = vrot.lane.b32.xlu1 %v31_v0, %s151_s10  ;;  %v117_v5 = vld.sshfl [vmem:[%s310_s0 + $0x4] sm:$0xff pattern:$0x11111807]  }
   0x3   :  { %11 = vrot.lane.b32.xlu0 %v10_v1, %s152_s11  ;;  %v2_v2 = vld [vmem:[%s310_s0] sm:$0x3f]   ;;  %v111_v3 = vld [vmem:[%s310_s0 + $0x8] sm:$0x3f]   ;;  %s153_s24 = smov 125   ;;  %s155_s29 = smov 123  }
   0x4   :  { %4 = vst.msk [vmem:[%s311_s1] ss:$6 sm:$0x3f] %vm3_vm0, %v2_v2   ;;  %112 = vst.msk [vmem:[%s311_s1 + $0x24] ss:$6 sm:$0x3f] %vm3_vm0, %v111_v3  }
   0x5   :  { %v137_v6 = vld.sshfl [vmem:[%s310_s0 + $0x3] sm:$0xff pattern:$0x11111807]   ;;  %v73_v7 = vld.sshfl [vmem:[%s310_s0] sm:$0xff pattern:$0x2918d05c]  }
   0x6   :  { %45 = vrot.lane.b32.xlu1 %v124_v4, %s151_s10  ;;  %s154_s0 = smov 124  }
   0x7   :  { %24 = vrot.lane.b32.xlu0 %v117_v5, %s152_s11 }
   0xa   :  { %66 = vrot.lane.b32.xlu1 %v124_v4, %s153_s24 }
   0xb   :  { %53 = vrot.lane.b32.xlu0 %v31_v0, %s153_s24 }
   0xe   :  { %85 = vrot.lane.b32.xlu1 %v137_v6, %s154_s0 }
   0xf   :  { %74 = vrot.lane.b32.xlu0 %v73_v7, %s154_s0 }
  0x12   :  { %104 = vrot.lane.b32.xlu1 %v137_v6, %s155_s29 }
  0x13   :  { %93 = vrot.lane.b32.xlu0 %v73_v7, %s155_s29 }
  0x74   :  { %v33_v8 = vpop.permute.xlu1 %32  }
  0x75   :  { %v12_v9 = vpop.permute.xlu0 %11   ;;  %120 = vst.msk [vmem:[%s311_s1 + $0x20] ss:$-30 sm:$0x3] %vm3_vm0, %v33_v8   ;;  %121 = vst.msk [vmem:[%s311_s1 + $0x80] ss:$-30 sm:$0x1c] %vm3_vm0, %v33_v8  }
  0x76   :  { %122 = vst.msk [vmem:[%s311_s1 + $0xc2] ss:$-30 sm:$0x60] %vm3_vm0, %v33_v8   ;;  %123 = vst.msk [vmem:[%s311_s1 + $0x2b] sm:$0x80] %vm3_vm0, %v33_v8  }
  0x77   :  { %113 = vst.msk [vmem:[%s311_s1 + $0x1] ss:$66 sm:$0x3] %vm3_vm0, %v12_v9   ;;  %114 = vst.msk [vmem:[%s311_s1 + $0x61] ss:$-30 sm:$0xc] %vm3_vm0, %v12_v9  }
  0x78   :  { %115 = vst.msk [vmem:[%s311_s1 + $0xa3] ss:$-30 sm:$0x30] %vm3_vm0, %v12_v9   ;;  %116 = vst.msk [vmem:[%s311_s1 + $0xe5] ss:$-30 sm:$0xc0] %vm3_vm0, %v12_v9   ;;  %v46_v10 = vpop.permute.xlu1 %45  }
  0x79   :  { %v25_v11 = vpop.permute.xlu0 %24   ;;  %125 = vst.msk [vmem:[%s311_s1 + $0x14] ss:$36 sm:$0x3] %vm3_vm0, %v46_v10   ;;  %126 = vst.msk [vmem:[%s311_s1 - $0x2e] ss:$36 sm:$0xc] %vm3_vm0, %v46_v10  }
  0x7a   :  { %118 = vst.msk [vmem:[%s311_s1 + $0x37] ss:$-30 sm:$0x3] %vm3_vm0, %v25_v11   ;;  %119 = vst.msk [vmem:[%s311_s1 + $0x79] ss:$-30 sm:$0xc] %vm3_vm0, %v25_v11  }
  0x7c   :  { %v67_v12 = vpop.permute.xlu1 %66  }
  0x7d   :  { %v54_v13 = vpop.permute.xlu0 %53   ;;  %132 = vst.msk [vmem:[%s311_s1 + $0x15] ss:$36 sm:$0x3] %vm3_vm0, %v67_v12   ;;  %133 = vst.msk [vmem:[%s311_s1 - $0x2d] ss:$36 sm:$0xc] %vm3_vm0, %v67_v12  }
  0x7e   :  { %127 = vst.msk [vmem:[%s311_s1 + $0x21] ss:$-30 sm:$0x3] %vm3_vm0, %v54_v13   ;;  %128 = vst.msk [vmem:[%s311_s1 + $0x81] ss:$-30 sm:$0x1c] %vm3_vm0, %v54_v13  }
  0x7f   :  { %129 = vst.msk [vmem:[%s311_s1 + $0xc3] ss:$-30 sm:$0x60] %vm3_vm0, %v54_v13   ;;  %130 = vst.msk [vmem:[%s311_s1 + $0x2c] sm:$0x80] %vm3_vm0, %v54_v13  }
  0x80   :  { %v86_v14 = vpop.permute.xlu1 %85  }
  0x81   :  { %v75_v15 = vpop.permute.xlu0 %74   ;;  %138 = vst.msk [vmem:[%s311_s1 + $0x34] ss:$-30 sm:$0x3] %vm3_vm0, %v86_v14   ;;  %139 = vst.msk [vmem:[%s311_s1 + $0x76] ss:$-30 sm:$0xc] %vm3_vm0, %v86_v14  }
  0x82   :  { %134 = vst.msk [vmem:[%s311_s1 + $0x40] ss:$-30 sm:$0x7] %vm3_vm0, %v75_v15   ;;  %135 = vst.msk [vmem:[%s311_s1 + $0xa0] ss:$-30 sm:$0x38] %vm3_vm0, %v75_v15  }
  0x83   :  { %136 = vst.msk [vmem:[%s311_s1 + $0xe2] ss:$-30 sm:$0xc0] %vm3_vm0, %v75_v15  }
  0x84   :  { %v105_v16 = vpop.permute.xlu1 %104  }
  0x85   :  { %v94_v17 = vpop.permute.xlu0 %93   ;;  %144 = vst.msk [vmem:[%s311_s1 + $0x35] ss:$-30 sm:$0x3] %vm3_vm0, %v105_v16   ;;  %145 = vst.msk [vmem:[%s311_s1 + $0x77] ss:$-30 sm:$0xc] %vm3_vm0, %v105_v16  }
  0x86   :  { %140 = vst.msk [vmem:[%s311_s1 + $0x41] ss:$-30 sm:$0x7] %vm3_vm0, %v94_v17   ;;  %141 = vst.msk [vmem:[%s311_s1 + $0xa1] ss:$-30 sm:$0x38] %vm3_vm0, %v94_v17  }
  0x87   :  { %142 = vst.msk [vmem:[%s311_s1 + $0xe3] ss:$-30 sm:$0xc0] %vm3_vm0, %v94_v17  }

// kernel: generator_forward.1
= control target key start
LH: loop header
LB: loop body
LE: loop exit
PB: predicated region body
PF: predicated region fallthrough
CT: control target
= control target key end

     0   :  { %s4694_s12 = smov 126   ;;  %s4695_s13 = smov 127   ;;  %s6404_s1 = inlined_call_operand.vmem [shape: bf16[2560,132], index: 1, kind: input, shape index: {}]   ;;  %s6405_s0 = inlined_call_operand.vmem [shape: bf16[72,2560], index: 0, kind: input, shape index: {}]   ;;  %s6406_s3 = inlined_call_operand.vmem [shape: f32[1,128], index: 3, kind: input, shape index: {}]   ;;  %s6407_s4 = inlined_call_operand.vmem [shape: f32[1,128], index: 4, kind: input, shape index: {}]   ;;  %s6408_s2 = inlined_call_operand.vmem [shape: s32[72,1], index: 2, kind: input, shape index: {}]   ;;  %s6409_s5 = inlined_call_operand.vmem [shape: f32[72,128], index: 5, kind: output, shape index: {}]  }
   0x1   :  { %v4053_v0 = vld [vmem:[%s6404_s1 + $0x74] ss:$8 sps:$4 sm:$0xff]   ;;  %v4057_v2 = vld [vmem:[%s6404_s1 + $0x70] ss:$8 sps:$4 sm:$0xff]   ;;  %v4059_v4 = vld [vmem:[%s6404_s1 + $0x64] ss:$8 sps:$4 sm:$0xff]  }
   0x2   :  { %v4055_v1 = vld [vmem:[%s6404_s1 + $0x174] ss:$8 sps:$4 sm:$0xff]   ;;  %2500 = vmatprep.subr.bf16.mxu0 %v4053_v0  ;;  %v4058_v3 = vld [vmem:[%s6404_s1 + $0x170] ss:$8 sps:$4 sm:$0xff]   ;;  %v4061_v5 = vld [vmem:[%s6404_s1 + $0x164] ss:$8 sps:$4 sm:$0xff]  }
   0x3   :  { %2581 = vmatprep.subr.bf16.mxu1 %v4055_v1  ;;  %2501 = vmatpush1.bf16.msra.mxu0 %v4057_v2  ;;  %v4063_v6 = vld [vmem:[%s6404_s1 + $0x60] ss:$8 sps:$4 sm:$0xff]   ;;  %v4065_v8 = vld [vmem:[%s6404_s1 + $0x54] ss:$8 sps:$4 sm:$0xff]   ;;  %v4069_v10 = vld [vmem:[%s6404_s1 + $0x50] ss:$8 sps:$4 sm:$0xff]  }
   0x4   :  { %2582 = vmatpush1.bf16.msra.mxu1 %v4058_v3  ;;  %2502 = vmatprep.subr.bf16.mxu0 %v4059_v4  ;;  %v4064_v7 = vld [vmem:[%s6404_s1 + $0x160] ss:$8 sps:$4 sm:$0xff]   ;;  %v4067_v9 = vld [vmem:[%s6404_s1 + $0x154] ss:$8 sps:$4 sm:$0xff]   ;;  %v4070_v11 = vld [vmem:[%s6404_s1 + $0x150] ss:$8 sps:$4 sm:$0xff]  }
   0x5   :  { %2583 = vmatprep.subr.bf16.mxu1 %v4061_v5  ;;  %v4071_v12 = vld [vmem:[%s6404_s1 + $0x44] ss:$8 sps:$4 sm:$0xff]   ;;  %v4075_v14 = vld [vmem:[%s6404_s1 + $0x40] ss:$8 sps:$4 sm:$0xff]   ;;  %v4077_v16 = vld [vmem:[%s6404_s1 + $0x34] ss:$8 sps:$4 sm:$0xff]  }
   0x6   :  { %v4073_v13 = vld [vmem:[%s6404_s1 + $0x144] ss:$8 sps:$4 sm:$0xff]   ;;  %v4076_v15 = vld [vmem:[%s6404_s1 + $0x140] ss:$8 sps:$4 sm:$0xff]   ;;  %v4079_v17 = vld [vmem:[%s6404_s1 + $0x134] ss:$8 sps:$4 sm:$0xff]  }
   0x7   :  { %2503 = vmatpush1.bf16.msra.mxu0 %v4063_v6  ;;  %v4081_v18 = vld [vmem:[%s6404_s1 + $0x30] ss:$8 sps:$4 sm:$0xff]   ;;  %v4083_v20 = vld [vmem:[%s6404_s1 + $0x24] ss:$8 sps:$4 sm:$0xff]   ;;  %v4087_v22 = vld [vmem:[%s6404_s1 + $0x20] ss:$8 sps:$4 sm:$0xff]  }
   0x8   :  { %2584 = vmatpush1.bf16.msra.mxu1 %v4064_v7  ;;  %2504 = vmatprep.subr.bf16.mxu0 %v4065_v8  ;;  %v4082_v19 = vld [vmem:[%s6404_s1 + $0x130] ss:$8 sps:$4 sm:$0xff]   ;;  %v4085_v21 = vld [vmem:[%s6404_s1 + $0x124] ss:$8 sps:$4 sm:$0xff]   ;;  %v4088_v23 = vld [vmem:[%s6404_s1 + $0x120] ss:$8 sps:$4 sm:$0xff]  }
   0x9   :  { %2585 = vmatprep.subr.bf16.mxu1 %v4067_v9  ;;  %v4089_v24 = vld [vmem:[%s6404_s1 + $0x14] ss:$8 sps:$4 sm:$0xff]   ;;  %v4093_v26 = vld [vmem:[%s6404_s1 + $0x10] ss:$8 sps:$4 sm:$0xff]   ;;  %v4095_v28 = vld [vmem:[%s6404_s1 + $0x4] ss:$8 sps:$4 sm:$0xff]  }
   0xa   :  { %v4091_v25 = vld [vmem:[%s6404_s1 + $0x114] ss:$8 sps:$4 sm:$0xff]   ;;  %v4094_v27 = vld [vmem:[%s6404_s1 + $0x110] ss:$8 sps:$4 sm:$0xff]   ;;  %v4097_v29 = vld [vmem:[%s6404_s1 + $0x104] ss:$8 sps:$4 sm:$0xff]  }
   0xb   :  { %2505 = vmatpush1.bf16.msra.mxu0 %v4069_v10  ;;  %v4099_v30 = vld [vmem:[%s6404_s1] ss:$8 sps:$4 sm:$0xff]   ;;  %v4101_v32 = vld [vmem:[%s6404_s1 + $0xf4] ss:$8 sps:$4 sm:$0xff]   ;;  %v4105_v34 = vld [vmem:[%s6404_s1 + $0xf0] ss:$8 sps:$4 sm:$0xff]  }
   0xc   :  { %2586 = vmatpush1.bf16.msra.mxu1 %v4070_v11  ;;  %2506 = vmatprep.subr.bf16.mxu0 %v4071_v12  ;;  %v4100_v31 = vld [vmem:[%s6404_s1 + $0x100] ss:$8 sps:$4 sm:$0xff]   ;;  %v4103_v33 = vld [vmem:[%s6404_s1 + $0x1f4] ss:$8 sps:$4 sm:$0xff]   ;;  %v4106_v35 = vld [vmem:[%s6404_s1 + $0x1f0] ss:$8 sps:$4 sm:$0xff]  }
   0xd   :  { %2587 = vmatprep.subr.bf16.mxu1 %v4073_v13  ;;  %v4107_v36 = vld [vmem:[%s6404_s1 + $0xe4] ss:$8 sps:$4 sm:$0xff]   ;;  %v4111_v38 = vld [vmem:[%s6404_s1 + $0xe0] ss:$8 sps:$4 sm:$0xff]   ;;  %v4113_v40 = vld [vmem:[%s6404_s1 + $0xd4] ss:$8 sps:$4 sm:$0xff]  }
   0xe   :  { %v4109_v37 = vld [vmem:[%s6404_s1 + $0x1e4] ss:$8 sps:$4 sm:$0xff]   ;;  %v4112_v39 = vld [vmem:[%s6404_s1 + $0x1e0] ss:$8 sps:$4 sm:$0xff]   ;;  %v4115_v41 = vld [vmem:[%s6404_s1 + $0x1d4] ss:$8 sps:$4 sm:$0xff]  }
   0xf   :  { %2507 = vmatpush1.bf16.msra.mxu0 %v4075_v14  ;;  %v4117_v42 = vld [vmem:[%s6404_s1 + $0xd0] ss:$8 sps:$4 sm:$0xff]   ;;  %v4119_v44 = vld [vmem:[%s6404_s1 + $0xc4] ss:$8 sps:$4 sm:$0xff]   ;;  %v4123_v46 = vld [vmem:[%s6404_s1 + $0xc0] ss:$8 sps:$4 sm:$0xff]  }
  0x10   :  { %2588 = vmatpush1.bf16.msra.mxu1 %v4076_v15  ;;  %2508 = vmatprep.subr.bf16.mxu0 %v4077_v16  ;;  %v4118_v43 = vld [vmem:[%s6404_s1 + $0x1d0] ss:$8 sps:$4 sm:$0xff]   ;;  %v4121_v45 = vld [vmem:[%s6404_s1 + $0x1c4] ss:$8 sps:$4 sm:$0xff]   ;;  %v4124_v47 = vld [vmem:[%s6404_s1 + $0x1c0] ss:$8 sps:$4 sm:$0xff]  }
  0x11   :  { %2589 = vmatprep.subr.bf16.mxu1 %v4079_v17  ;;  %v4125_v48 = vld [vmem:[%s6404_s1 + $0xb4] ss:$8 sps:$4 sm:$0xff]   ;;  %v4129_v52 = vld [vmem:[%s6404_s1 + $0xb0] ss:$8 sps:$4 sm:$0xff]   ;;  %v4131_v54 = vld [vmem:[%s6404_s1 + $0xa4] ss:$8 sps:$4 sm:$0xff]  }
  0x12   :  { %v4151_v49 = vld [vmem:[%s6405_s0 + $0x4] ss:$80 sps:$4 sm:$0xff]   ;;  %v4154_v51 = vld [vmem:[%s6405_s0 + $0xc] ss:$80 sps:$4 sm:$0xff]   ;;  %v4130_v53 = vld [vmem:[%s6404_s1 + $0x1b0] ss:$8 sps:$4 sm:$0xff]  }
  0x13   :  { %2509 = vmatpush1.bf16.msra.mxu0 %v4081_v18  ;;  %v4127_v50 = vld [vmem:[%s6404_s1 + $0x1b4] ss:$8 sps:$4 sm:$0xff]   ;;  %2532 = vmatprep.mubr.bf16.mxu0 %v4151_v49  ;;  %v4133_v55 = vld [vmem:[%s6404_s1 + $0x1a4] ss:$8 sps:$4 sm:$0xff]   ;;  %v4135_v56 = vld [vmem:[%s6404_s1 + $0xa0] ss:$8 sps:$4 sm:$0xff]  }
  0x14   :  { %2590 = vmatpush1.bf16.msra.mxu1 %v4082_v19  ;;  %2510 = vmatprep.subr.bf16.mxu0 %v4083_v20  ;;  %v4136_v57 = vld [vmem:[%s6404_s1 + $0x1a0] ss:$8 sps:$4 sm:$0xff]   ;;  %v4137_v58 = vld [vmem:[%s6404_s1 + $0x94] ss:$8 sps:$4 sm:$0xff]   ;;  %v4141_v60 = vld [vmem:[%s6404_s1 + $0x90] ss:$8 sps:$4 sm:$0xff]  }
  0x15   :  { %2591 = vmatprep.subr.bf16.mxu1 %v4085_v21  ;;  %2613 = vmatprep.mubr.bf16.mxu1 %v4154_v51  ;;  %v4139_v59 = vld [vmem:[%s6404_s1 + $0x194] ss:$8 sps:$4 sm:$0xff]   ;;  %v4142_v61 = vld [vmem:[%s6404_s1 + $0x190] ss:$8 sps:$4 sm:$0xff]   ;;  %v4143_v62 = vld [vmem:[%s6404_s1 + $0x84] ss:$8 sps:$4 sm:$0xff]  }
  0x16   :  { %v4145_v63 = vld [vmem:[%s6404_s1 + $0x184] ss:$8 sps:$4 sm:$0xff]   ;;  %v4147_v0 = vld [vmem:[%s6404_s1 + $0x80] ss:$8 sps:$4 sm:$0xff]   ;;  %v4157_v2 = vld [vmem:[%s6404_s1 + $0x274] ss:$8 sps:$4 sm:$0xff]  }
  0x17   :  { %2511 = vmatpush1.bf16.msra.mxu0 %v4087_v22  ;;  %v4148_v1 = vld [vmem:[%s6404_s1 + $0x180] ss:$8 sps:$4 sm:$0xff]   ;;  %v4160_v3 = vld [vmem:[%s6404_s1 + $0x374] ss:$8 sps:$4 sm:$0xff]   ;;  %v4155_v6 = vld [vmem:[%s6404_s1 + $0x270] ss:$8 sps:$4 sm:$0xff]  }
  0x18   :  { %2592 = vmatpush1.bf16.msra.mxu1 %v4088_v23  ;;  %2512 = vmatprep.subr.bf16.mxu0 %v4089_v24  ;;  %v4149_v4 = vld [vmem:[%s6405_s0] ss:$80 sps:$4 sm:$0xff]   ;;  %v4152_v5 = vld [vmem:[%s6405_s0 + $0x8] ss:$80 sps:$4 sm:$0xff]   ;;  %v4163_v8 = vld [vmem:[%s6404_s1 + $0x264] ss:$8 sps:$4 sm:$0xff]  }
  0x19   :  { %2593 = vmatprep.subr.bf16.mxu1 %v4091_v25  ;;  %v4158_v7 = vld [vmem:[%s6404_s1 + $0x370] ss:$8 sps:$4 sm:$0xff]   ;;  %v4166_v9 = vld [vmem:[%s6404_s1 + $0x364] ss:$8 sps:$4 sm:$0xff]   ;;  %v4161_v12 = vld [vmem:[%s6404_s1 + $0x260] ss:$8 sps:$4 sm:$0xff]  }
  0x1a   :  { %v4197_v10 = vld [vmem:[%s6405_s0 + $0xa4] ss:$80 sps:$4 sm:$0xff]   ;;  %v4199_v11 = vld [vmem:[%s6405_s0 + $0xac] ss:$80 sps:$4 sm:$0xff]   ;;  %v4164_v13 = vld [vmem:[%s6404_s1 + $0x360] ss:$8 sps:$4 sm:$0xff]  }
  0x1b   :  { %2513 = vmatpush1.bf16.msra.mxu0 %v4093_v26  ;;  %v4169_v14 = vld [vmem:[%s6404_s1 + $0x254] ss:$8 sps:$4 sm:$0xff]   ;;  %v4167_v16 = vld [vmem:[%s6404_s1 + $0x250] ss:$8 sps:$4 sm:$0xff]   ;;  %v4175_v20 = vld [vmem:[%s6404_s1 + $0x244] ss:$8 sps:$4 sm:$0xff]  }
  0x1c   :  { %2594 = vmatpush1.bf16.msra.mxu1 %v4094_v27  ;;  %2514 = vmatprep.subr.bf16.mxu0 %v4095_v28  ;;  %v4172_v15 = vld [vmem:[%s6404_s1 + $0x354] ss:$8 sps:$4 sm:$0xff]   ;;  %v4170_v17 = vld [vmem:[%s6404_s1 + $0x350] ss:$8 sps:$4 sm:$0xff]   ;;  %v4178_v21 = vld [vmem:[%s6404_s1 + $0x344] ss:$8 sps:$4 sm:$0xff]  }
  0x1d   :  { %2595 = vmatprep.subr.bf16.mxu1 %v4097_v29  ;;  %v4201_v18 = vld [vmem:[%s6405_s0 + $0xa0] ss:$80 sps:$4 sm:$0xff]   ;;  %v4202_v19 = vld [vmem:[%s6405_s0 + $0xa8] ss:$80 sps:$4 sm:$0xff]   ;;  %v4215_v22 = vld [vmem:[%s6405_s0 + $0x144] ss:$80 sps:$4 sm:$0xff]  }
  0x1e   :  { %v4217_v23 = vld [vmem:[%s6405_s0 + $0x14c] ss:$80 sps:$4 sm:$0xff]   ;;  %v4173_v24 = vld [vmem:[%s6404_s1 + $0x240] ss:$8 sps:$4 sm:$0xff]   ;;  %v4179_v28 = vld [vmem:[%s6404_s1 + $0x230] ss:$8 sps:$4 sm:$0xff]  }
  0x1f   :  { %2515 = vmatpush1.bf16.msra.mxu0 %v4099_v30  ;;  %v4176_v25 = vld [vmem:[%s6404_s1 + $0x340] ss:$8 sps:$4 sm:$0xff]   ;;  %v4181_v26 = vld [vmem:[%s6404_s1 + $0x234] ss:$8 sps:$4 sm:$0xff]   ;;  %v4182_v29 = vld [vmem:[%s6404_s1 + $0x330] ss:$8 sps:$4 sm:$0xff]  }
  0x20   :  { %2596 = vmatpush1.bf16.msra.mxu1 %v4100_v31  ;;  %2516 = vmatprep.subr.bf16.mxu0 %v4101_v32  ;;  %v4184_v27 = vld [vmem:[%s6404_s1 + $0x334] ss:$8 sps:$4 sm:$0xff]   ;;  %v4219_v30 = vld [vmem:[%s6405_s0 + $0x140] ss:$80 sps:$4 sm:$0xff]   ;;  %v4220_v31 = vld [vmem:[%s6405_s0 + $0x148] ss:$80 sps:$4 sm:$0xff]  }
  0x21   :  { %2597 = vmatprep.subr.bf16.mxu1 %v4103_v33  ;;  %v4187_v32 = vld [vmem:[%s6404_s1 + $0x224] ss:$8 sps:$4 sm:$0xff]   ;;  %v4206_v51 = vld [vmem:[%s6404_s1 + $0x300] ss:$8 sps:$4 sm:$0xff]  }
  0x22   :  { %v4190_v33 = vld [vmem:[%s6404_s1 + $0x324] ss:$8 sps:$4 sm:$0xff]  }
  0x23   :  { %2517 = vmatpush2.bf16.msra.mxu0 %v4105_v34  ;;  %v4233_v34 = vld [vmem:[%s6405_s0 + $0x1e4] ss:$80 sps:$4 sm:$0xff]  }
  0x24   :  { %2598 = vmatpush2.bf16.msra.mxu1 %v4106_v35  ;;  %2518 = vmatprep.subr.bf16.mxu0 %v4107_v36  ;;  %v4235_v35 = vld [vmem:[%s6405_s0 + $0x1ec] ss:$80 sps:$4 sm:$0xff]   ;;  %v4185_v36 = vld [vmem:[%s6404_s1 + $0x220] ss:$8 sps:$4 sm:$0xff]  }
  0x25   :  { %2599 = vmatprep.subr.bf16.mxu1 %v4109_v37  ;;  %v4188_v37 = vld [vmem:[%s6404_s1 + $0x320] ss:$8 sps:$4 sm:$0xff]  }
  0x27   :  { %2519 = vmatpush2.bf16.msra.mxu0 %v4111_v38  ;;  %v4193_v38 = vld [vmem:[%s6404_s1 + $0x214] ss:$8 sps:$4 sm:$0xff]  }
  0x28   :  { %2600 = vmatpush2.bf16.msra.mxu1 %v4112_v39  ;;  %2520 = vmatprep.subr.bf16.mxu0 %v4113_v40  ;;  %v4196_v39 = vld [vmem:[%s6404_s1 + $0x314] ss:$8 sps:$4 sm:$0xff]   ;;  %v4191_v40 = vld [vmem:[%s6404_s1 + $0x210] ss:$8 sps:$4 sm:$0xff]  }
  0x29   :  { %2601 = vmatprep.subr.bf16.mxu1 %v4115_v41  ;;  %v4194_v41 = vld [vmem:[%s6404_s1 + $0x310] ss:$8 sps:$4 sm:$0xff]  }
  0x2b   :  { %2521 = vmatpush2.bf16.msra.mxu0 %v4117_v42  ;;  %v4237_v42 = vld [vmem:[%s6405_s0 + $0x1e0] ss:$80 sps:$4 sm:$0xff]  }
  0x2c   :  { %2602 = vmatpush2.bf16.msra.mxu1 %v4118_v43  ;;  %2522 = vmatprep.subr.bf16.mxu0 %v4119_v44  ;;  %v4238_v43 = vld [vmem:[%s6405_s0 + $0x1e8] ss:$80 sps:$4 sm:$0xff]   ;;  %v100_v44 = vld [vmem:[%s6405_s0 + $0x280] sm:$0xff] }
  0x2d   :  { %2603 = vmatprep.subr.bf16.mxu1 %v4121_v45  ;;  %v101_v45 = vld [vmem:[%s6405_s0 + $0x288] sm:$0xff] }
  0x2e   :  { %v3710_v49 = vcombine.high %v101_v45, %v101_v45 }
  0x2f   :  { %2523 = vmatpush2.bf16.msra.mxu0 %v4123_v46  ;;  %v4205_v46 = vld [vmem:[%s6404_s1 + $0x204] ss:$8 sps:$4 sm:$0xff]  }
  0x30   :  { %2604 = vmatpush2.bf16.msra.mxu1 %v4124_v47  ;;  %2524 = vmatprep.subr.bf16.mxu0 %v4125_v48  ;;  %v4208_v47 = vld [vmem:[%s6404_s1 + $0x304] ss:$8 sps:$4 sm:$0xff]   ;;  %v3708_v48 = vcombine.high %v100_v44, %v100_v44 }
  0x31   :  { %2605 = vmatprep.subr.bf16.mxu1 %v4127_v50  ;;  %v4203_v50 = vld [vmem:[%s6404_s1 + $0x200] ss:$8 sps:$4 sm:$0xff]  }
  0x33   :  { %2525 = vmatpush2.bf16.msra.mxu0 %v4129_v52  ;;  %v4211_v52 = vld [vmem:[%s6404_s1 + $0x2f4] ss:$8 sps:$4 sm:$0xff]  }
  0x34   :  { %2606 = vmatpush2.bf16.msra.mxu1 %v4130_v53  ;;  %2526 = vmatprep.subr.bf16.mxu0 %v4131_v54  ;;  %v4214_v53 = vld [vmem:[%s6404_s1 + $0x3f4] ss:$8 sps:$4 sm:$0xff]   ;;  %v3707_v54 = vcombine.low %v100_v44, %v100_v44 }
  0x35   :  { %2607 = vmatprep.subr.bf16.mxu1 %v4133_v55  ;;  %v3709_v55 = vcombine.low %v101_v45, %v101_v45  ;;  %v4309_v44 = vld [vmem:[%s6405_s0 + $0x154] ss:$80 sps:$4 sm:$0xff]   ;;  %v4318_v45 = vld [vmem:[%s6405_s0 + $0x15c] ss:$80 sps:$4 sm:$0xff]  }
  0x37   :  { %2527 = vmatpush2.bf16.msra.mxu0 %v4135_v56  ;;  %v4209_v56 = vld [vmem:[%s6404_s1 + $0x2f0] ss:$8 sps:$4 sm:$0xff]  }
  0x38   :  { %2608 = vmatpush2.bf16.msra.mxu1 %v4136_v57  ;;  %2528 = vmatprep.subr.bf16.mxu0 %v4137_v58  ;;  %v4212_v57 = vld [vmem:[%s6404_s1 + $0x3f0] ss:$8 sps:$4 sm:$0xff]   ;;  %v4223_v58 = vld [vmem:[%s6404_s1 + $0x2e4] ss:$8 sps:$4 sm:$0xff]  }
  0x39   :  { %2609 = vmatprep.subr.bf16.mxu1 %v4139_v59  ;;  %v4226_v59 = vld [vmem:[%s6404_s1 + $0x3e4] ss:$8 sps:$4 sm:$0xff]  }
  0x3b   :  { %2529 = vmatpush2.bf16.msra.mxu0 %v4141_v60  ;;  %v4275_v60 = vld [vmem:[%s6405_s0 + $0x14] ss:$80 sps:$4 sm:$0xff]  }
  0x3c   :  { %2610 = vmatpush2.bf16.msra.mxu1 %v4142_v61  ;;  %2530 = vmatprep.subr.bf16.mxu0 %v4143_v62  ;;  %v4278_v61 = vld [vmem:[%s6405_s0 + $0x1c] ss:$80 sps:$4 sm:$0xff]   ;;  %v4221_v62 = vld [vmem:[%s6404_s1 + $0x2e0] ss:$8 sps:$4 sm:$0xff]  }
  0x3d   :  { %2611 = vmatprep.subr.bf16.mxu1 %v4145_v63  ;;  %v4224_v63 = vld [vmem:[%s6404_s1 + $0x3e0] ss:$8 sps:$4 sm:$0xff]  }
  0x3f   :  { %2531 = vmatpush2.bf16.msra.mxu0 %v4147_v0  ;;  %v4229_v0 = vld [vmem:[%s6404_s1 + $0x2d4] ss:$8 sps:$4 sm:$0xff]  }
  0x40   :  { %2612 = vmatpush2.bf16.msra.mxu1 %v4148_v1  ;;  %2662 = vmatprep.subr.bf16.mxu0 %v4157_v2  ;;  %v4232_v1 = vld [vmem:[%s6404_s1 + $0x3d4] ss:$8 sps:$4 sm:$0xff]   ;;  %v4227_v2 = vld [vmem:[%s6404_s1 + $0x2d0] ss:$8 sps:$4 sm:$0xff]  }
  0x41   :  { %2743 = vmatprep.subr.bf16.mxu1 %v4160_v3  ;;  %v4230_v3 = vld [vmem:[%s6404_s1 + $0x3d0] ss:$8 sps:$4 sm:$0xff]  }
  0x42   :  { %2533 = vmatmul.mubr.bf16.vlgmr.msra.gmra.mxu0 %v4149_v4  ;;  %v4241_v4 = vld [vmem:[%s6404_s1 + $0x2c4] ss:$8 sps:$4 sm:$0xff]  }
  0x43   :  { %2614 = vmatmul.mubr.bf16.vlgmr.msra.gmra.mxu1 %v4152_v5  ;;  %2663 = vmatpush1.bf16.msra.mxu0 %v4155_v6  ;;  %v4244_v5 = vld [vmem:[%s6404_s1 + $0x3c4] ss:$8 sps:$4 sm:$0xff]   ;;  %v4239_v6 = vld [vmem:[%s6404_s1 + $0x2c0] ss:$8 sps:$4 sm:$0xff]  }
  0x44   :  { %2744 = vmatpush1.bf16.msra.mxu1 %v4158_v7  ;;  %2664 = vmatprep.subr.bf16.mxu0 %v4163_v8  ;;  %v4242_v7 = vld [vmem:[%s6404_s1 + $0x3c0] ss:$8 sps:$4 sm:$0xff]   ;;  %v4247_v8 = vld [vmem:[%s6404_s1 + $0x2b4] ss:$8 sps:$4 sm:$0xff]  }
  0x45   :  { %2745 = vmatprep.subr.bf16.mxu1 %v4166_v9  ;;  %2542 = vmatprep.mubr.bf16.mxu0 %v4197_v10  ;;  %v4250_v9 = vld [vmem:[%s6404_s1 + $0x3b4] ss:$8 sps:$4 sm:$0xff]   ;;  %v4245_v10 = vld [vmem:[%s6404_s1 + $0x2b0] ss:$8 sps:$4 sm:$0xff]  }
  0x46   :  { %2623 = vmatprep.mubr.bf16.mxu1 %v4199_v11  ;;  %v4248_v11 = vld [vmem:[%s6404_s1 + $0x3b0] ss:$8 sps:$4 sm:$0xff]  }
  0x47   :  { %2665 = vmatpush1.bf16.msra.mxu0 %v4161_v12  ;;  %v4256_v12 = vld [vmem:[%s6404_s1 + $0x2a4] ss:$8 sps:$4 sm:$0xff]  }
  0x48   :  { %2746 = vmatpush1.bf16.msra.mxu1 %v4164_v13  ;;  %2666 = vmatprep.subr.bf16.mxu0 %v4169_v14  ;;  %v4259_v13 = vld [vmem:[%s6404_s1 + $0x3a4] ss:$8 sps:$4 sm:$0xff]   ;;  %v4254_v14 = vld [vmem:[%s6404_s1 + $0x2a0] ss:$8 sps:$4 sm:$0xff]  }
  0x49   :  { %2747 = vmatprep.subr.bf16.mxu1 %v4172_v15  ;;  %v4257_v15 = vld [vmem:[%s6404_s1 + $0x3a0] ss:$8 sps:$4 sm:$0xff]  }
  0x4a   :  { %2543 = vmatmul.mubr.bf16.gmra.mxu0 %v4201_v18  ;;  %v4261_v18 = vld [vmem:[%s6404_s1 + $0x290] ss:$8 sps:$4 sm:$0xff]  }
  0x4b   :  { %2624 = vmatmul.mubr.bf16.gmra.mxu1 %v4202_v19  ;;  %2667 = vmatpush1.bf16.msra.mxu0 %v4167_v16  ;;  %v4263_v16 = vld [vmem:[%s6404_s1 + $0x294] ss:$8 sps:$4 sm:$0xff]   ;;  %v4264_v19 = vld [vmem:[%s6404_s1 + $0x390] ss:$8 sps:$4 sm:$0xff]  }
  0x4c   :  { %2748 = vmatpush1.bf16.msra.mxu1 %v4170_v17  ;;  %2668 = vmatprep.subr.bf16.mxu0 %v4175_v20  ;;  %v4266_v17 = vld [vmem:[%s6404_s1 + $0x394] ss:$8 sps:$4 sm:$0xff]   ;;  %v4269_v20 = vld [vmem:[%s6404_s1 + $0x284] ss:$8 sps:$4 sm:$0xff]  }
  0x4d   :  { %2749 = vmatprep.subr.bf16.mxu1 %v4178_v21  ;;  %2552 = vmatprep.mubr.bf16.mxu0 %v4215_v22  ;;  %v4272_v21 = vld [vmem:[%s6404_s1 + $0x384] ss:$8 sps:$4 sm:$0xff]   ;;  %v4267_v22 = vld [vmem:[%s6404_s1 + $0x280] ss:$8 sps:$4 sm:$0xff]  }
  0x4e   :  { %2633 = vmatprep.mubr.bf16.mxu1 %v4217_v23  ;;  %v4270_v23 = vld [vmem:[%s6404_s1 + $0x380] ss:$8 sps:$4 sm:$0xff]  }
  0x4f   :  { %2669 = vmatpush1.bf16.msra.mxu0 %v4173_v24  ;;  %v4273_v24 = vld [vmem:[%s6405_s0 + $0x10] ss:$80 sps:$4 sm:$0xff]  }
  0x50   :  { %2750 = vmatpush1.bf16.msra.mxu1 %v4176_v25  ;;  %2670 = vmatprep.subr.bf16.mxu0 %v4181_v26  ;;  %v4281_v25 = vld [vmem:[%s6404_s1 + $0x474] ss:$8 sps:$4 sm:$0xff]  }
  0x51   :  { %2751 = vmatprep.subr.bf16.mxu1 %v4184_v27  ;;  %v4284_v26 = vld [vmem:[%s6404_s1 + $0x574] ss:$8 sps:$4 sm:$0xff]   ;;  %v4276_v27 = vld [vmem:[%s6405_s0 + $0x18] ss:$80 sps:$4 sm:$0xff]  }
  0x52   :  { %2553 = vmatmul.mubr.bf16.gmra.mxu0 %v4219_v30  ;;  %v4287_v30 = vld [vmem:[%s6404_s1 + $0x464] ss:$8 sps:$4 sm:$0xff]  }
  0x53   :  { %2634 = vmatmul.mubr.bf16.gmra.mxu1 %v4220_v31  ;;  %2671 = vmatpush1.bf16.msra.mxu0 %v4179_v28  ;;  %v4279_v28 = vld [vmem:[%s6404_s1 + $0x470] ss:$8 sps:$4 sm:$0xff]   ;;  %v4290_v31 = vld [vmem:[%s6404_s1 + $0x564] ss:$8 sps:$4 sm:$0xff]  }
  0x54   :  { %2752 = vmatpush1.bf16.msra.mxu1 %v4182_v29  ;;  %2672 = vmatprep.subr.bf16.mxu0 %v4187_v32  ;;  %v4282_v29 = vld [vmem:[%s6404_s1 + $0x570] ss:$8 sps:$4 sm:$0xff]   ;;  %v4291_v32 = vld [vmem:[%s6405_s0 + $0xb4] ss:$80 sps:$4 sm:$0xff]  }
  0x55   :  { %2753 = vmatprep.subr.bf16.mxu1 %v4190_v33  ;;  %2562 = vmatprep.mubr.bf16.mxu0 %v4233_v34  ;;  %v4300_v33 = vld [vmem:[%s6405_s0 + $0xbc] ss:$80 sps:$4 sm:$0xff]   ;;  %v4285_v34 = vld [vmem:[%s6404_s1 + $0x460] ss:$8 sps:$4 sm:$0xff]  }
  0x56   :  { %2643 = vmatprep.mubr.bf16.mxu1 %v4235_v35  ;;  %v4288_v35 = vld [vmem:[%s6404_s1 + $0x560] ss:$8 sps:$4 sm:$0xff]  }
  0x57   :  { %2673 = vmatpush1.bf16.msra.mxu0 %v4185_v36  ;;  %v4296_v36 = vld [vmem:[%s6404_s1 + $0x454] ss:$8 sps:$4 sm:$0xff]  }
  0x58   :  { %2754 = vmatpush1.bf16.msra.mxu1 %v4188_v37  ;;  %2674 = vmatprep.subr.bf16.mxu0 %v4193_v38  ;;  %v4299_v37 = vld [vmem:[%s6404_s1 + $0x554] ss:$8 sps:$4 sm:$0xff]   ;;  %v4293_v38 = vld [vmem:[%s6405_s0 + $0xb0] ss:$80 sps:$4 sm:$0xff]  }
  0x59   :  { %2755 = vmatprep.subr.bf16.mxu1 %v4196_v39  ;;  %v4294_v39 = vld [vmem:[%s6404_s1 + $0x450] ss:$8 sps:$4 sm:$0xff]  }
  0x5a   :  { %2563 = vmatmul.mubr.bf16.gmra.mxu0 %v4237_v42  ;;  %v4305_v42 = vld [vmem:[%s6404_s1 + $0x444] ss:$8 sps:$4 sm:$0xff]  }
  0x5b   :  { %2644 = vmatmul.mubr.bf16.gmra.mxu1 %v4238_v43  ;;  %2675 = vmatpush1.bf16.msra.mxu0 %v4191_v40  ;;  %v4297_v40 = vld [vmem:[%s6404_s1 + $0x550] ss:$8 sps:$4 sm:$0xff]   ;;  %v4308_v43 = vld [vmem:[%s6404_s1 + $0x544] ss:$8 sps:$4 sm:$0xff]  }
  0x5c   :  { %2756 = vmatpush1.bf16.msra.mxu1 %v4194_v41  ;;  %2676 = vmatprep.subr.bf16.mxu0 %v4205_v46  ;;  %v4302_v41 = vld [vmem:[%s6405_s0 + $0xb8] ss:$80 sps:$4 sm:$0xff]  }
  0x5d   :  { %2757 = vmatprep.subr.bf16.mxu1 %v4208_v47  ;;  %2572 = vmatprep.mubr.bf16.mxu0 %v3708_v48  ;;  %v4303_v46 = vld [vmem:[%s6404_s1 + $0x440] ss:$8 sps:$4 sm:$0xff]   ;;  %v4314_v48 = vld [vmem:[%s6404_s1 + $0x434] ss:$8 sps:$4 sm:$0xff]  }
  0x5e   :  { %2653 = vmatprep.mubr.bf16.mxu1 %v3710_v49  ;;  %v4306_v47 = vld [vmem:[%s6404_s1 + $0x540] ss:$8 sps:$4 sm:$0xff]   ;;  %v4317_v49 = vld [vmem:[%s6404_s1 + $0x534] ss:$8 sps:$4 sm:$0xff]  }
  0x5f   :  { %2677 = vmatpush1.bf16.msra.mxu0 %v4203_v50  ;;  %v4311_v50 = vld [vmem:[%s6405_s0 + $0x150] ss:$80 sps:$4 sm:$0xff]  }
  0x60   :  { %2758 = vmatpush1.bf16.msra.mxu1 %v4206_v51  ;;  %2678 = vmatprep.subr.bf16.mxu0 %v4211_v52  ;;  %v4312_v51 = vld [vmem:[%s6404_s1 + $0x430] ss:$8 sps:$4 sm:$0xff]  }
  0x61   :  { %2759 = vmatprep.subr.bf16.mxu1 %v4214_v53  ;;  %v4315_v52 = vld [vmem:[%s6404_s1 + $0x530] ss:$8 sps:$4 sm:$0xff]  }
  0x62   :  { %2573 = vmatmul.mubr.bf16.gmra.mxu0 %v3707_v54  ;;  %v4320_v53 = vld [vmem:[%s6405_s0 + $0x158] ss:$80 sps:$4 sm:$0xff]   ;;  %v4323_v54 = vld [vmem:[%s6404_s1 + $0x424] ss:$8 sps:$4 sm:$0xff]  }
  0x63   :  { %2654 = vmatmul.mubr.bf16.gmra.mxu1 %v3709_v55  ;;  %2679 = vmatpush2.bf16.msra.mxu0 %v4209_v56  ;;  %v4326_v55 = vld [vmem:[%s6404_s1 + $0x524] ss:$8 sps:$4 sm:$0xff]  }
  0x64   :  { %2760 = vmatpush2.bf16.msra.mxu1 %v4212_v57  ;;  %2680 = vmatprep.subr.bf16.mxu0 %v4223_v58  ;;  %v4327_v56 = vld [vmem:[%s6405_s0 + $0x1f4] ss:$80 sps:$4 sm:$0xff]   ;;  %v4336_v57 = vld [vmem:[%s6405_s0 + $0x1fc] ss:$80 sps:$4 sm:$0xff]   ;;  %v4321_v58 = vld [vmem:[%s6404_s1 + $0x420] ss:$8 sps:$4 sm:$0xff]  }
  0x65   :  { %2761 = vmatprep.subr.bf16.mxu1 %v4226_v59  ;;  %2694 = vmatprep.mubr.bf16.mxu0 %v4275_v60  ;;  %v4324_v59 = vld [vmem:[%s6404_s1 + $0x520] ss:$8 sps:$4 sm:$0xff]   ;;  %v4332_v60 = vld [vmem:[%s6404_s1 + $0x414] ss:$8 sps:$4 sm:$0xff]  }
  0x66   :  { %2775 = vmatprep.mubr.bf16.mxu1 %v4278_v61  ;;  %v4329_v61 = vld [vmem:[%s6405_s0 + $0x1f0] ss:$80 sps:$4 sm:$0xff]  }
  0x67   :  { %2681 = vmatpush2.bf16.msra.mxu0 %v4221_v62  ;;  %v4335_v62 = vld [vmem:[%s6404_s1 + $0x514] ss:$8 sps:$4 sm:$0xff]  }
  0x68   :  { %2762 = vmatpush2.bf16.msra.mxu1 %v4224_v63  ;;  %2682 = vmatprep.subr.bf16.mxu0 %v4229_v0  ;;  %v4330_v63 = vld [vmem:[%s6404_s1 + $0x410] ss:$8 sps:$4 sm:$0xff]  }
  0x69   :  { %2763 = vmatprep.subr.bf16.mxu1 %v4232_v1  ;;  %v4333_v0 = vld [vmem:[%s6404_s1 + $0x510] ss:$8 sps:$4 sm:$0xff]  }
  0x6a   :  { %v4338_v1 = vld [vmem:[%s6405_s0 + $0x1f8] ss:$80 sps:$4 sm:$0xff]  }
  0x6b   :  { %2683 = vmatpush2.bf16.msra.mxu0 %v4227_v2  ;;  %v102_v2 = vld [vmem:[%s6405_s0 + $0x290] sm:$0xff] }
  0x6c   :  { %2764 = vmatpush2.bf16.msra.mxu1 %v4230_v3  ;;  %2684 = vmatprep.subr.bf16.mxu0 %v4241_v4  ;;  %v103_v3 = vld [vmem:[%s6405_s0 + $0x298] sm:$0xff]  ;;  %v4341_v4 = vld [vmem:[%s6404_s1 + $0x404] ss:$8 sps:$4 sm:$0xff]  }
  0x6d   :  { %2765 = vmatprep.subr.bf16.mxu1 %v4244_v5  ;;  %v4344_v5 = vld [vmem:[%s6404_s1 + $0x504] ss:$8 sps:$4 sm:$0xff]  }
  0x6f   :  { %2685 = vmatpush2.bf16.msra.mxu0 %v4239_v6  ;;  %v3712_v6 = vcombine.high %v102_v2, %v102_v2 }
  0x70   :  { %2766 = vmatpush2.bf16.msra.mxu1 %v4242_v7  ;;  %2686 = vmatprep.subr.bf16.mxu0 %v4247_v8  ;;  %v3714_v7 = vcombine.high %v103_v3, %v103_v3  ;;  %v4339_v8 = vld [vmem:[%s6404_s1 + $0x400] ss:$8 sps:$4 sm:$0xff]  }
  0x71   :  { %2767 = vmatprep.subr.bf16.mxu1 %v4250_v9  ;;  %v4342_v9 = vld [vmem:[%s6404_s1 + $0x500] ss:$8 sps:$4 sm:$0xff]  }
  0x73   :  { %2687 = vmatpush2.bf16.msra.mxu0 %v4245_v10  ;;  %v4349_v10 = vld [vmem:[%s6404_s1 + $0x4f4] ss:$8 sps:$4 sm:$0xff]  }
  0x74   :  { %2768 = vmatpush2.bf16.msra.mxu1 %v4248_v11  ;;  %2688 = vmatprep.subr.bf16.mxu0 %v4256_v12  ;;  %v4352_v11 = vld [vmem:[%s6404_s1 + $0x5f4] ss:$8 sps:$4 sm:$0xff]   ;;  %v3711_v12 = vcombine.low %v102_v2, %v102_v2 }
  0x75   :  { %2769 = vmatprep.subr.bf16.mxu1 %v4259_v13  ;;  %v4347_v13 = vld [vmem:[%s6404_s1 + $0x4f0] ss:$8 sps:$4 sm:$0xff]   ;;  %v4433_v2 = vld [vmem:[%s6405_s0 + $0x164] ss:$80 sps:$4 sm:$0xff]  }
  0x77   :  { %2689 = vmatpush2.bf16.msra.mxu0 %v4254_v14  ;;  %v4350_v14 = vld [vmem:[%s6404_s1 + $0x5f0] ss:$8 sps:$4 sm:$0xff]  }
  0x78   :  { %2770 = vmatpush2.bf16.msra.mxu1 %v4257_v15  ;;  %2690 = vmatprep.subr.bf16.mxu0 %v4263_v16  ;;  %v3713_v15 = vcombine.low %v103_v3, %v103_v3  ;;  %v4357_v16 = vld [vmem:[%s6404_s1 + $0x4e4] ss:$8 sps:$4 sm:$0xff]  }
  0x79   :  { %2771 = vmatprep.subr.bf16.mxu1 %v4266_v17  ;;  %v4360_v17 = vld [vmem:[%s6404_s1 + $0x5e4] ss:$8 sps:$4 sm:$0xff]  }
  0x7a   :  { %v4442_v3 = vld [vmem:[%s6405_s0 + $0x16c] ss:$80 sps:$4 sm:$0xff]  }
  0x7b   :  { %2691 = vmatpush2.bf16.msra.mxu0 %v4261_v18  ;;  %v4399_v18 = vld [vmem:[%s6405_s0 + $0x24] ss:$80 sps:$4 sm:$0xff]  }
  0x7c   :  { %2772 = vmatpush2.bf16.msra.mxu1 %v4264_v19  ;;  %2692 = vmatprep.subr.bf16.mxu0 %v4269_v20  ;;  %v4402_v19 = vld [vmem:[%s6405_s0 + $0x2c] ss:$80 sps:$4 sm:$0xff]   ;;  %v4355_v20 = vld [vmem:[%s6404_s1 + $0x4e0] ss:$8 sps:$4 sm:$0xff]  }
  0x7d   :  { %2773 = vmatprep.subr.bf16.mxu1 %v4272_v21  ;;  %v4358_v21 = vld [vmem:[%s6404_s1 + $0x5e0] ss:$8 sps:$4 sm:$0xff]  }
  0x7f   :  { %2693 = vmatpush2.bf16.msra.mxu0 %v4267_v22  ;;  %v4363_v22 = vld [vmem:[%s6404_s1 + $0x4d4] ss:$8 sps:$4 sm:$0xff]  }
  0x80   :  { %2774 = vmatpush2.bf16.msra.mxu1 %v4270_v23  ;;  %2824 = vmatprep.subr.bf16.mxu0 %v4281_v25  ;;  %v4366_v23 = vld [vmem:[%s6404_s1 + $0x5d4] ss:$8 sps:$4 sm:$0xff]   ;;  %v4364_v25 = vld [vmem:[%s6404_s1 + $0x5d0] ss:$8 sps:$4 sm:$0xff]  }
  0x81   :  { %2905 = vmatprep.subr.bf16.mxu1 %v4284_v26  ;;  %v4369_v26 = vld [vmem:[%s6404_s1 + $0x4c4] ss:$8 sps:$4 sm:$0xff]  }
  0x82   :  { %2695 = vmatmul.mubr.bf16.vlgmr.msra.gmra.mxu0 %v4273_v24  ;;  %v4361_v24 = vld [vmem:[%s6404_s1 + $0x4d0] ss:$8 sps:$4 sm:$0xff]  }
  0x83   :  { %2776 = vmatmul.mubr.bf16.vlgmr.msra.gmra.mxu1 %v4276_v27  ;;  %2825 = vmatpush1.bf16.msra.mxu0 %v4279_v28  ;;  %v4372_v27 = vld [vmem:[%s6404_s1 + $0x5c4] ss:$8 sps:$4 sm:$0xff]   ;;  %v4367_v28 = vld [vmem:[%s6404_s1 + $0x4c0] ss:$8 sps:$4 sm:$0xff]  }
  0x84   :  { %2906 = vmatpush1.bf16.msra.mxu1 %v4282_v29  ;;  %2826 = vmatprep.subr.bf16.mxu0 %v4287_v30  ;;  %v4370_v29 = vld [vmem:[%s6404_s1 + $0x5c0] ss:$8 sps:$4 sm:$0xff]   ;;  %v4375_v30 = vld [vmem:[%s6404_s1 + $0x4b4] ss:$8 sps:$4 sm:$0xff]  }
  0x85   :  { %2907 = vmatprep.subr.bf16.mxu1 %v4290_v31  ;;  %2704 = vmatprep.mubr.bf16.mxu0 %v4291_v32  ;;  %v4378_v31 = vld [vmem:[%s6404_s1 + $0x5b4] ss:$8 sps:$4 sm:$0xff]   ;;  %v4373_v32 = vld [vmem:[%s6404_s1 + $0x4b0] ss:$8 sps:$4 sm:$0xff]  }
  0x86   :  { %2785 = vmatprep.mubr.bf16.mxu1 %v4300_v33  ;;  %v4376_v33 = vld [vmem:[%s6404_s1 + $0x5b0] ss:$8 sps:$4 sm:$0xff]  }
  0x87   :  { %2827 = vmatpush1.bf16.msra.mxu0 %v4285_v34  ;;  %v4381_v34 = vld [vmem:[%s6404_s1 + $0x4a4] ss:$8 sps:$4 sm:$0xff]  }
  0x88   :  { %2908 = vmatpush1.bf16.msra.mxu1 %v4288_v35  ;;  %2828 = vmatprep.subr.bf16.mxu0 %v4296_v36  ;;  %v4384_v35 = vld [vmem:[%s6404_s1 + $0x5a4] ss:$8 sps:$4 sm:$0xff]   ;;  %v4379_v36 = vld [vmem:[%s6404_s1 + $0x4a0] ss:$8 sps:$4 sm:$0xff]  }
  0x89   :  { %2909 = vmatprep.subr.bf16.mxu1 %v4299_v37  ;;  %v4382_v37 = vld [vmem:[%s6404_s1 + $0x5a0] ss:$8 sps:$4 sm:$0xff]  }
  0x8a   :  { %2705 = vmatmul.mubr.bf16.gmra.mxu0 %v4293_v38  ;;  %v4387_v38 = vld [vmem:[%s6404_s1 + $0x494] ss:$8 sps:$4 sm:$0xff]  }
  0x8b   :  { %2786 = vmatmul.mubr.bf16.gmra.mxu1 %v4302_v41  ;;  %2829 = vmatpush1.bf16.msra.mxu0 %v4294_v39  ;;  %v4390_v39 = vld [vmem:[%s6404_s1 + $0x594] ss:$8 sps:$4 sm:$0xff]   ;;  %v4388_v41 = vld [vmem:[%s6404_s1 + $0x590] ss:$8 sps:$4 sm:$0xff]  }
  0x8c   :  { %2910 = vmatpush1.bf16.msra.mxu1 %v4297_v40  ;;  %2830 = vmatprep.subr.bf16.mxu0 %v4305_v42  ;;  %v4385_v40 = vld [vmem:[%s6404_s1 + $0x490] ss:$8 sps:$4 sm:$0xff]   ;;  %v4393_v42 = vld [vmem:[%s6404_s1 + $0x484] ss:$8 sps:$4 sm:$0xff]  }
  0x8d   :  { %2911 = vmatprep.subr.bf16.mxu1 %v4308_v43  ;;  %2714 = vmatprep.mubr.bf16.mxu0 %v4309_v44  ;;  %v4396_v43 = vld [vmem:[%s6404_s1 + $0x584] ss:$8 sps:$4 sm:$0xff]   ;;  %v4391_v44 = vld [vmem:[%s6404_s1 + $0x480] ss:$8 sps:$4 sm:$0xff]  }
  0x8e   :  { %2795 = vmatprep.mubr.bf16.mxu1 %v4318_v45  ;;  %v4394_v45 = vld [vmem:[%s6404_s1 + $0x580] ss:$8 sps:$4 sm:$0xff]  }
  0x8f   :  { %2831 = vmatpush1.bf16.msra.mxu0 %v4303_v46  ;;  %v4397_v46 = vld [vmem:[%s6405_s0 + $0x20] ss:$80 sps:$4 sm:$0xff]  }
  0x90   :  { %2912 = vmatpush1.bf16.msra.mxu1 %v4306_v47  ;;  %2832 = vmatprep.subr.bf16.mxu0 %v4314_v48  ;;  %v4405_v47 = vld [vmem:[%s6404_s1 + $0x674] ss:$8 sps:$4 sm:$0xff]  }
  0x91   :  { %2913 = vmatprep.subr.bf16.mxu1 %v4317_v49  ;;  %v4408_v48 = vld [vmem:[%s6404_s1 + $0x774] ss:$8 sps:$4 sm:$0xff]   ;;  %v4400_v49 = vld [vmem:[%s6405_s0 + $0x28] ss:$80 sps:$4 sm:$0xff]  }
  0x92   :  { %2715 = vmatmul.mubr.bf16.gmra.mxu0 %v4311_v50  ;;  %v4403_v50 = vld [vmem:[%s6404_s1 + $0x670] ss:$8 sps:$4 sm:$0xff]  }
  0x93   :  { %2796 = vmatmul.mubr.bf16.gmra.mxu1 %v4320_v53  ;;  %2833 = vmatpush1.bf16.msra.mxu0 %v4312_v51  ;;  %v4406_v51 = vld [vmem:[%s6404_s1 + $0x770] ss:$8 sps:$4 sm:$0xff]   ;;  %v4414_v53 = vld [vmem:[%s6404_s1 + $0x764] ss:$8 sps:$4 sm:$0xff]  }
  0x94   :  { %2914 = vmatpush1.bf16.msra.mxu1 %v4315_v52  ;;  %2834 = vmatprep.subr.bf16.mxu0 %v4323_v54  ;;  %v4411_v52 = vld [vmem:[%s6404_s1 + $0x664] ss:$8 sps:$4 sm:$0xff]  }
  0x95   :  { %2915 = vmatprep.subr.bf16.mxu1 %v4326_v55  ;;  %2724 = vmatprep.mubr.bf16.mxu0 %v4327_v56  ;;  %v4415_v54 = vld [vmem:[%s6405_s0 + $0xc4] ss:$80 sps:$4 sm:$0xff]   ;;  %v4424_v55 = vld [vmem:[%s6405_s0 + $0xcc] ss:$80 sps:$4 sm:$0xff]   ;;  %v4409_v56 = vld [vmem:[%s6404_s1 + $0x660] ss:$8 sps:$4 sm:$0xff]  }
  0x96   :  { %2805 = vmatprep.mubr.bf16.mxu1 %v4336_v57  ;;  %v4412_v57 = vld [vmem:[%s6404_s1 + $0x760] ss:$8 sps:$4 sm:$0xff]  }
  0x97   :  { %2835 = vmatpush1.bf16.msra.mxu0 %v4321_v58  ;;  %v4417_v58 = vld [vmem:[%s6405_s0 + $0xc0] ss:$80 sps:$4 sm:$0xff]  }
  0x98   :  { %2916 = vmatpush1.bf16.msra.mxu1 %v4324_v59  ;;  %2836 = vmatprep.subr.bf16.mxu0 %v4332_v60  ;;  %v4420_v59 = vld [vmem:[%s6404_s1 + $0x654] ss:$8 sps:$4 sm:$0xff]  }
  0x99   :  { %2917 = vmatprep.subr.bf16.mxu1 %v4335_v62  ;;  %v4423_v60 = vld [vmem:[%s6404_s1 + $0x754] ss:$8 sps:$4 sm:$0xff]   ;;  %v4426_v62 = vld [vmem:[%s6405_s0 + $0xc8] ss:$80 sps:$4 sm:$0xff]  }
  0x9a   :  { %2725 = vmatmul.mubr.bf16.gmra.mxu0 %v4329_v61  ;;  %v4418_v61 = vld [vmem:[%s6404_s1 + $0x650] ss:$8 sps:$4 sm:$0xff]  }
  0x9b   :  { %2806 = vmatmul.mubr.bf16.gmra.mxu1 %v4338_v1  ;;  %2837 = vmatpush1.bf16.msra.mxu0 %v4330_v63  ;;  %v4421_v63 = vld [vmem:[%s6404_s1 + $0x750] ss:$8 sps:$4 sm:$0xff]   ;;  %v4432_v1 = vld [vmem:[%s6404_s1 + $0x744] ss:$8 sps:$4 sm:$0xff]  }
  0x9c   :  { %2918 = vmatpush1.bf16.msra.mxu1 %v4333_v0  ;;  %2838 = vmatprep.subr.bf16.mxu0 %v4341_v4  ;;  %v4429_v0 = vld [vmem:[%s6404_s1 + $0x644] ss:$8 sps:$4 sm:$0xff]   ;;  %v4427_v4 = vld [vmem:[%s6404_s1 + $0x640] ss:$8 sps:$4 sm:$0xff]  }
  0x9d   :  { %2919 = vmatprep.subr.bf16.mxu1 %v4344_v5  ;;  %2734 = vmatprep.mubr.bf16.mxu0 %v3712_v6  ;;  %v4430_v5 = vld [vmem:[%s6404_s1 + $0x740] ss:$8 sps:$4 sm:$0xff]  }
  0x9e   :  { %2815 = vmatprep.mubr.bf16.mxu1 %v3714_v7  ;;  %v4435_v6 = vld [vmem:[%s6405_s0 + $0x160] ss:$80 sps:$4 sm:$0xff]   ;;  %v4438_v7 = vld [vmem:[%s6404_s1 + $0x634] ss:$8 sps:$4 sm:$0xff]  }
  0x9f   :  { %2839 = vmatpush1.bf16.msra.mxu0 %v4339_v8  ;;  %v4441_v8 = vld [vmem:[%s6404_s1 + $0x734] ss:$8 sps:$4 sm:$0xff]  }
  0xa0   :  { %2920 = vmatpush1.bf16.msra.mxu1 %v4342_v9  ;;  %2840 = vmatprep.subr.bf16.mxu0 %v4349_v10  ;;  %v4436_v9 = vld [vmem:[%s6404_s1 + $0x630] ss:$8 sps:$4 sm:$0xff]  }
  0xa1   :  { %2921 = vmatprep.subr.bf16.mxu1 %v4352_v11  ;;  %v4444_v10 = vld [vmem:[%s6405_s0 + $0x168] ss:$80 sps:$4 sm:$0xff]  }
  0xa2   :  { %2735 = vmatmul.mubr.bf16.gmra.mxu0 %v3711_v12  ;;  %v4439_v11 = vld [vmem:[%s6404_s1 + $0x730] ss:$8 sps:$4 sm:$0xff]   ;;  %v4447_v12 = vld [vmem:[%s6404_s1 + $0x624] ss:$8 sps:$4 sm:$0xff]  }
  0xa3   :  { %2816 = vmatmul.mubr.bf16.gmra.mxu1 %v3713_v15  ;;  %2841 = vmatpush2.bf16.msra.mxu0 %v4347_v13  ;;  %v4450_v13 = vld [vmem:[%s6404_s1 + $0x724] ss:$8 sps:$4 sm:$0xff]  }
  0xa4   :  { %2922 = vmatpush2.bf16.msra.mxu1 %v4350_v14  ;;  %2842 = vmatprep.subr.bf16.mxu0 %v4357_v16  ;;  %v4451_v14 = vld [vmem:[%s6405_s0 + $0x204] ss:$80 sps:$4 sm:$0xff]   ;;  %v4460_v15 = vld [vmem:[%s6405_s0 + $0x20c] ss:$80 sps:$4 sm:$0xff]   ;;  %v4445_v16 = vld [vmem:[%s6404_s1 + $0x620] ss:$8 sps:$4 sm:$0xff]  }
  0xa5   :  { %2923 = vmatprep.subr.bf16.mxu1 %v4360_v17  ;;  %2856 = vmatprep.mubr.bf16.mxu0 %v4399_v18  ;;  %v4448_v17 = vld [vmem:[%s6404_s1 + $0x720] ss:$8 sps:$4 sm:$0xff]   ;;  %v4456_v18 = vld [vmem:[%s6404_s1 + $0x614] ss:$8 sps:$4 sm:$0xff]  }
  0xa6   :  { %2937 = vmatprep.mubr.bf16.mxu1 %v4402_v19  ;;  %v4453_v19 = vld [vmem:[%s6405_s0 + $0x200] ss:$80 sps:$4 sm:$0xff]  }
  0xa7   :  { %2843 = vmatpush2.bf16.msra.mxu0 %v4355_v20  ;;  %v4459_v20 = vld [vmem:[%s6404_s1 + $0x714] ss:$8 sps:$4 sm:$0xff]  }
  0xa8   :  { %2924 = vmatpush2.bf16.msra.mxu1 %v4358_v21  ;;  %2844 = vmatprep.subr.bf16.mxu0 %v4363_v22  ;;  %v4462_v21 = vld [vmem:[%s6405_s0 + $0x208] ss:$80 sps:$4 sm:$0xff]   ;;  %v104_v22 = vld [vmem:[%s6405_s0 + $0x2a0] sm:$0xff] }
  0xa9   :  { %2925 = vmatprep.subr.bf16.mxu1 %v4366_v23  ;;  %v105_v23 = vld [vmem:[%s6405_s0 + $0x2a8] sm:$0xff] }
  0xab   :  { %2845 = vmatpush2.bf16.msra.mxu0 %v4361_v24  ;;  %v4454_v24 = vld [vmem:[%s6404_s1 + $0x610] ss:$8 sps:$4 sm:$0xff]  }
  0xac   :  { %2926 = vmatpush2.bf16.msra.mxu1 %v4364_v25  ;;  %2846 = vmatprep.subr.bf16.mxu0 %v4369_v26  ;;  %v4457_v25 = vld [vmem:[%s6404_s1 + $0x710] ss:$8 sps:$4 sm:$0xff]   ;;  %v4465_v26 = vld [vmem:[%s6404_s1 + $0x604] ss:$8 sps:$4 sm:$0xff]  }
  0xad   :  { %2927 = vmatprep.subr.bf16.mxu1 %v4372_v27  ;;  %v4468_v27 = vld [vmem:[%s6404_s1 + $0x704] ss:$8 sps:$4 sm:$0xff]  }
  0xaf   :  { %2847 = vmatpush2.bf16.msra.mxu0 %v4367_v28  ;;  %v3716_v28 = vcombine.high %v104_v22, %v104_v22 }
  0xb0   :  { %2928 = vmatpush2.bf16.msra.mxu1 %v4370_v29  ;;  %2848 = vmatprep.subr.bf16.mxu0 %v4375_v30  ;;  %v3718_v29 = vcombine.high %v105_v23, %v105_v23  ;;  %v4463_v30 = vld [vmem:[%s6404_s1 + $0x600] ss:$8 sps:$4 sm:$0xff]  }
  0xb1   :  { %2929 = vmatprep.subr.bf16.mxu1 %v4378_v31  ;;  %v4466_v31 = vld [vmem:[%s6404_s1 + $0x700] ss:$8 sps:$4 sm:$0xff]  }
  0xb3   :  { %2849 = vmatpush2.bf16.msra.mxu0 %v4373_v32  ;;  %v4473_v32 = vld [vmem:[%s6404_s1 + $0x6f4] ss:$8 sps:$4 sm:$0xff]  }
  0xb4   :  { %2930 = vmatpush2.bf16.msra.mxu1 %v4376_v33  ;;  %2850 = vmatprep.subr.bf16.mxu0 %v4381_v34  ;;  %v4476_v33 = vld [vmem:[%s6404_s1 + $0x7f4] ss:$8 sps:$4 sm:$0xff]   ;;  %v3715_v34 = vcombine.low %v104_v22, %v104_v22 }
  0xb5   :  { %2931 = vmatprep.subr.bf16.mxu1 %v4384_v35  ;;  %v4471_v35 = vld [vmem:[%s6404_s1 + $0x6f0] ss:$8 sps:$4 sm:$0xff]   ;;  %v4547_v22 = vld [vmem:[%s6404_s1 + $0x954] ss:$8 sps:$4 sm:$0xff]  }
  0xb7   :  { %2851 = vmatpush2.bf16.msra.mxu0 %v4379_v36  ;;  %v3717_v36 = vcombine.low %v105_v23, %v105_v23 }
  0xb8   :  { %2932 = vmatpush2.bf16.msra.mxu1 %v4382_v37  ;;  %2852 = vmatprep.subr.bf16.mxu0 %v4387_v38  ;;  %v4474_v37 = vld [vmem:[%s6404_s1 + $0x7f0] ss:$8 sps:$4 sm:$0xff]   ;;  %v4481_v38 = vld [vmem:[%s6404_s1 + $0x6e4] ss:$8 sps:$4 sm:$0xff]  }
  0xb9   :  { %2933 = vmatprep.subr.bf16.mxu1 %v4390_v39  ;;  %v4484_v39 = vld [vmem:[%s6404_s1 + $0x7e4] ss:$8 sps:$4 sm:$0xff]  }
  0xbb   :  { %2853 = vmatpush2.bf16.msra.mxu0 %v4385_v40  ;;  %v4523_v40 = vld [vmem:[%s6405_s0 + $0x34] ss:$80 sps:$4 sm:$0xff]  }
  0xbc   :  { %2934 = vmatpush2.bf16.msra.mxu1 %v4388_v41  ;;  %2854 = vmatprep.subr.bf16.mxu0 %v4393_v42  ;;  %v4526_v41 = vld [vmem:[%s6405_s0 + $0x3c] ss:$80 sps:$4 sm:$0xff]   ;;  %v4479_v42 = vld [vmem:[%s6404_s1 + $0x6e0] ss:$8 sps:$4 sm:$0xff]  }
  0xbd   :  { %2935 = vmatprep.subr.bf16.mxu1 %v4396_v43  ;;  %v4482_v43 = vld [vmem:[%s6404_s1 + $0x7e0] ss:$8 sps:$4 sm:$0xff]  }
  0xbf   :  { %2855 = vmatpush2.bf16.msra.mxu0 %v4391_v44  ;;  %v4487_v44 = vld [vmem:[%s6404_s1 + $0x6d4] ss:$8 sps:$4 sm:$0xff]  }
  0xc0   :  { %2936 = vmatpush2.bf16.msra.mxu1 %v4394_v45  ;;  %2986 = vmatprep.subr.bf16.mxu0 %v4405_v47  ;;  %v4490_v45 = vld [vmem:[%s6404_s1 + $0x7d4] ss:$8 sps:$4 sm:$0xff]   ;;  %v4488_v47 = vld [vmem:[%s6404_s1 + $0x7d0] ss:$8 sps:$4 sm:$0xff]  }
  0xc1   :  { %3067 = vmatprep.subr.bf16.mxu1 %v4408_v48  ;;  %v4493_v48 = vld [vmem:[%s6404_s1 + $0x6c4] ss:$8 sps:$4 sm:$0xff]  }
  0xc2   :  { %2857 = vmatmul.mubr.bf16.vlgmr.msra.gmra.mxu0 %v4397_v46  ;;  %v4485_v46 = vld [vmem:[%s6404_s1 + $0x6d0] ss:$8 sps:$4 sm:$0xff]  }
  0xc3   :  { %2938 = vmatmul.mubr.bf16.vlgmr.msra.gmra.mxu1 %v4400_v49  ;;  %2987 = vmatpush1.bf16.msra.mxu0 %v4403_v50  ;;  %v4496_v49 = vld [vmem:[%s6404_s1 + $0x7c4] ss:$8 sps:$4 sm:$0xff]   ;;  %v4491_v50 = vld [vmem:[%s6404_s1 + $0x6c0] ss:$8 sps:$4 sm:$0xff]  }
  0xc4   :  { %3068 = vmatpush1.bf16.msra.mxu1 %v4406_v51  ;;  %2988 = vmatprep.subr.bf16.mxu0 %v4411_v52  ;;  %v4494_v51 = vld [vmem:[%s6404_s1 + $0x7c0] ss:$8 sps:$4 sm:$0xff]   ;;  %v4499_v52 = vld [vmem:[%s6404_s1 + $0x6b4] ss:$8 sps:$4 sm:$0xff]  }
  0xc5   :  { %3069 = vmatprep.subr.bf16.mxu1 %v4414_v53  ;;  %2866 = vmatprep.mubr.bf16.mxu0 %v4415_v54  ;;  %v4502_v53 = vld [vmem:[%s6404_s1 + $0x7b4] ss:$8 sps:$4 sm:$0xff]   ;;  %v4497_v54 = vld [vmem:[%s6404_s1 + $0x6b0] ss:$8 sps:$4 sm:$0xff]  }
  0xc6   :  { %2947 = vmatprep.mubr.bf16.mxu1 %v4424_v55  ;;  %v4500_v55 = vld [vmem:[%s6404_s1 + $0x7b0] ss:$8 sps:$4 sm:$0xff]  }
  0xc7   :  { %2989 = vmatpush1.bf16.msra.mxu0 %v4409_v56  ;;  %v4505_v56 = vld [vmem:[%s6404_s1 + $0x6a4] ss:$8 sps:$4 sm:$0xff]  }
  0xc8   :  { %3070 = vmatpush1.bf16.msra.mxu1 %v4412_v57  ;;  %2990 = vmatprep.subr.bf16.mxu0 %v4420_v59  ;;  %v4508_v57 = vld [vmem:[%s6404_s1 + $0x7a4] ss:$8 sps:$4 sm:$0xff]   ;;  %v4506_v59 = vld [vmem:[%s6404_s1 + $0x7a0] ss:$8 sps:$4 sm:$0xff]  }
  0xc9   :  { %3071 = vmatprep.subr.bf16.mxu1 %v4423_v60  ;;  %v4511_v60 = vld [vmem:[%s6404_s1 + $0x694] ss:$8 sps:$4 sm:$0xff]  }
  0xca   :  { %2867 = vmatmul.mubr.bf16.gmra.mxu0 %v4417_v58  ;;  %v4503_v58 = vld [vmem:[%s6404_s1 + $0x6a0] ss:$8 sps:$4 sm:$0xff]  }
  0xcb   :  { %2948 = vmatmul.mubr.bf16.gmra.mxu1 %v4426_v62  ;;  %2991 = vmatpush1.bf16.msra.mxu0 %v4418_v61  ;;  %v4514_v61 = vld [vmem:[%s6404_s1 + $0x794] ss:$8 sps:$4 sm:$0xff]   ;;  %v4509_v62 = vld [vmem:[%s6404_s1 + $0x690] ss:$8 sps:$4 sm:$0xff]  }
  0xcc   :  { %3072 = vmatpush1.bf16.msra.mxu1 %v4421_v63  ;;  %2992 = vmatprep.subr.bf16.mxu0 %v4429_v0  ;;  %v4512_v63 = vld [vmem:[%s6404_s1 + $0x790] ss:$8 sps:$4 sm:$0xff]   ;;  %v4517_v0 = vld [vmem:[%s6404_s1 + $0x684] ss:$8 sps:$4 sm:$0xff]  }
  0xcd   :  { %3073 = vmatprep.subr.bf16.mxu1 %v4432_v1  ;;  %2876 = vmatprep.mubr.bf16.mxu0 %v4433_v2  ;;  %v4520_v1 = vld [vmem:[%s6404_s1 + $0x784] ss:$8 sps:$4 sm:$0xff]   ;;  %v4515_v2 = vld [vmem:[%s6404_s1 + $0x680] ss:$8 sps:$4 sm:$0xff]  }
  0xce   :  { %2957 = vmatprep.mubr.bf16.mxu1 %v4442_v3  ;;  %v4518_v3 = vld [vmem:[%s6404_s1 + $0x780] ss:$8 sps:$4 sm:$0xff]  }
  0xcf   :  { %2993 = vmatpush1.bf16.msra.mxu0 %v4427_v4  ;;  %v4529_v4 = vld [vmem:[%s6404_s1 + $0x874] ss:$8 sps:$4 sm:$0xff]  }
  0xd0   :  { %3074 = vmatpush1.bf16.msra.mxu1 %v4430_v5  ;;  %2994 = vmatprep.subr.bf16.mxu0 %v4438_v7  ;;  %v4532_v5 = vld [vmem:[%s6404_s1 + $0x974] ss:$8 sps:$4 sm:$0xff]   ;;  %v4524_v7 = vld [vmem:[%s6405_s0 + $0x38] ss:$80 sps:$4 sm:$0xff]  }
  0xd1   :  { %3075 = vmatprep.subr.bf16.mxu1 %v4441_v8  ;;  %v4527_v8 = vld [vmem:[%s6404_s1 + $0x870] ss:$8 sps:$4 sm:$0xff]  }
  0xd2   :  { %2877 = vmatmul.mubr.bf16.gmra.mxu0 %v4435_v6  ;;  %v4521_v6 = vld [vmem:[%s6405_s0 + $0x30] ss:$80 sps:$4 sm:$0xff]  }
  0xd3   :  { %2958 = vmatmul.mubr.bf16.gmra.mxu1 %v4444_v10  ;;  %2995 = vmatpush1.bf16.msra.mxu0 %v4436_v9  ;;  %v4530_v9 = vld [vmem:[%s6404_s1 + $0x970] ss:$8 sps:$4 sm:$0xff]   ;;  %v4535_v10 = vld [vmem:[%s6404_s1 + $0x864] ss:$8 sps:$4 sm:$0xff]  }
  0xd4   :  { %3076 = vmatpush1.bf16.msra.mxu1 %v4439_v11  ;;  %2996 = vmatprep.subr.bf16.mxu0 %v4447_v12  ;;  %v4538_v11 = vld [vmem:[%s6404_s1 + $0x964] ss:$8 sps:$4 sm:$0xff]  }
  0xd5   :  { %3077 = vmatprep.subr.bf16.mxu1 %v4450_v13  ;;  %2886 = vmatprep.mubr.bf16.mxu0 %v4451_v14  ;;  %v4539_v12 = vld [vmem:[%s6405_s0 + $0xd4] ss:$80 sps:$4 sm:$0xff]   ;;  %v4548_v13 = vld [vmem:[%s6405_s0 + $0xdc] ss:$80 sps:$4 sm:$0xff]  }
  0xd6   :  { %2967 = vmatprep.mubr.bf16.mxu1 %v4460_v15 }
  0xd7   :  { %2997 = vmatpush1.bf16.msra.mxu0 %v4445_v16  ;;  %v4533_v16 = vld [vmem:[%s6404_s1 + $0x860] ss:$8 sps:$4 sm:$0xff]  }
  0xd8   :  { %3078 = vmatpush1.bf16.msra.mxu1 %v4448_v17  ;;  %2998 = vmatprep.subr.bf16.mxu0 %v4456_v18  ;;  %v4536_v17 = vld [vmem:[%s6404_s1 + $0x960] ss:$8 sps:$4 sm:$0xff]  }
  0xd9   :  { %3079 = vmatprep.subr.bf16.mxu1 %v4459_v20 }
  0xda   :  { %2887 = vmatmul.mubr.bf16.gmra.mxu0 %v4453_v19  ;;  %v4544_v19 = vld [vmem:[%s6404_s1 + $0x854] ss:$8 sps:$4 sm:$0xff]  }
  0xdb   :  { %2968 = vmatmul.mubr.bf16.gmra.mxu1 %v4462_v21  ;;  %2999 = vmatpush1.bf16.msra.mxu0 %v4454_v24  ;;  %v4541_v24 = vld [vmem:[%s6405_s0 + $0xd0] ss:$80 sps:$4 sm:$0xff]  }
  0xdc   :  { %3080 = vmatpush1.bf16.msra.mxu1 %v4457_v25  ;;  %3000 = vmatprep.subr.bf16.mxu0 %v4465_v26 }
  0xdd   :  { %3081 = vmatprep.subr.bf16.mxu1 %v4468_v27  ;;  %2896 = vmatprep.mubr.bf16.mxu0 %v3716_v28  ;;  %v4542_v27 = vld [vmem:[%s6404_s1 + $0x850] ss:$8 sps:$4 sm:$0xff]  }
  0xde   :  { %2977 = vmatprep.mubr.bf16.mxu1 %v3718_v29  ;;  %v4545_v28 = vld [vmem:[%s6404_s1 + $0x950] ss:$8 sps:$4 sm:$0xff]  }
  0xdf   :  { %3001 = vmatpush1.bf16.msra.mxu0 %v4463_v30  ;;  %v4550_v29 = vld [vmem:[%s6405_s0 + $0xd8] ss:$80 sps:$4 sm:$0xff]  }
  0xe0   :  { %3082 = vmatpush1.bf16.msra.mxu1 %v4466_v31  ;;  %3002 = vmatprep.subr.bf16.mxu0 %v4473_v32  ;;  %v4553_v31 = vld [vmem:[%s6404_s1 + $0x844] ss:$8 sps:$4 sm:$0xff]  }
  0xe1   :  { %3083 = vmatprep.subr.bf16.mxu1 %v4476_v33 }
  0xe2   :  { %2897 = vmatmul.mubr.bf16.gmra.mxu0 %v3715_v34  ;;  %v4556_v34 = vld [vmem:[%s6404_s1 + $0x944] ss:$8 sps:$4 sm:$0xff]  }
  0xe3   :  { %2978 = vmatmul.mubr.bf16.gmra.mxu1 %v3717_v36  ;;  %3003 = vmatpush2.bf16.msra.mxu0 %v4471_v35  ;;  %v4557_v36 = vld [vmem:[%s6405_s0 + $0x174] ss:$80 sps:$4 sm:$0xff]  }
  0xe4   :  { %3084 = vmatpush2.bf16.msra.mxu1 %v4474_v37  ;;  %3004 = vmatprep.subr.bf16.mxu0 %v4481_v38  ;;  %v4566_v37 = vld [vmem:[%s6405_s0 + $0x17c] ss:$80 sps:$4 sm:$0xff]   ;;  %v4551_v38 = vld [vmem:[%s6404_s1 + $0x840] ss:$8 sps:$4 sm:$0xff]  }
  0xe5   :  { %3085 = vmatprep.subr.bf16.mxu1 %v4484_v39  ;;  %3018 = vmatprep.mubr.bf16.mxu0 %v4523_v40 }
  0xe6   :  { %3099 = vmatprep.mubr.bf16.mxu1 %v4526_v41  ;;  %v4554_v41 = vld [vmem:[%s6404_s1 + $0x940] ss:$8 sps:$4 sm:$0xff]  }
  0xe7   :  { %3005 = vmatpush2.bf16.msra.mxu0 %v4479_v42 }
  0xe8   :  { %3086 = vmatpush2.bf16.msra.mxu1 %v4482_v43  ;;  %3006 = vmatprep.subr.bf16.mxu0 %v4487_v44  ;;  %v4562_v43 = vld [vmem:[%s6404_s1 + $0x834] ss:$8 sps:$4 sm:$0xff]  }
  0xe9   :  { %3087 = vmatprep.subr.bf16.mxu1 %v4490_v45  ;;  %v4565_v44 = vld [vmem:[%s6404_s1 + $0x934] ss:$8 sps:$4 sm:$0xff]  }
  0xeb   :  { %3007 = vmatpush2.bf16.msra.mxu0 %v4485_v46 }
  0xec   :  { %3088 = vmatpush2.bf16.msra.mxu1 %v4488_v47  ;;  %3008 = vmatprep.subr.bf16.mxu0 %v4493_v48  ;;  %v4559_v48 = vld [vmem:[%s6405_s0 + $0x170] ss:$80 sps:$4 sm:$0xff]  }
  0xed   :  { %3089 = vmatprep.subr.bf16.mxu1 %v4496_v49  ;;  %v4568_v49 = vld [vmem:[%s6405_s0 + $0x178] ss:$80 sps:$4 sm:$0xff]  }
  0xef   :  { %3009 = vmatpush2.bf16.msra.mxu0 %v4491_v50 }
  0xf0   :  { %3090 = vmatpush2.bf16.msra.mxu1 %v4494_v51  ;;  %3010 = vmatprep.subr.bf16.mxu0 %v4499_v52  ;;  %v4560_v52 = vld [vmem:[%s6404_s1 + $0x830] ss:$8 sps:$4 sm:$0xff]  }
  0xf1   :  { %3091 = vmatprep.subr.bf16.mxu1 %v4502_v53  ;;  %v4563_v53 = vld [vmem:[%s6404_s1 + $0x930] ss:$8 sps:$4 sm:$0xff]  }
  0xf3   :  { %3011 = vmatpush2.bf16.msra.mxu0 %v4497_v54 }
  0xf4   :  { %3092 = vmatpush2.bf16.msra.mxu1 %v4500_v55  ;;  %3012 = vmatprep.subr.bf16.mxu0 %v4505_v56  ;;  %v4571_v55 = vld [vmem:[%s6404_s1 + $0x824] ss:$8 sps:$4 sm:$0xff]  }
  0xf5   :  { %3093 = vmatprep.subr.bf16.mxu1 %v4508_v57  ;;  %v4574_v56 = vld [vmem:[%s6404_s1 + $0x924] ss:$8 sps:$4 sm:$0xff]  }
  0xf7   :  { %3013 = vmatpush2.bf16.msra.mxu0 %v4503_v58 }
  0xf8   :  { %3094 = vmatpush2.bf16.msra.mxu1 %v4506_v59  ;;  %3014 = vmatprep.subr.bf16.mxu0 %v4511_v60  ;;  %v4575_v59 = vld [vmem:[%s6405_s0 + $0x214] ss:$80 sps:$4 sm:$0xff]   ;;  %v4584_v60 = vld [vmem:[%s6405_s0 + $0x21c] ss:$80 sps:$4 sm:$0xff]  }
  0xf9   :  { %3095 = vmatprep.subr.bf16.mxu1 %v4514_v61 }
  0xfb   :  { %3015 = vmatpush2.bf16.msra.mxu0 %v4509_v62 }
  0xfc   :  { %3096 = vmatpush2.bf16.msra.mxu1 %v4512_v63  ;;  %3016 = vmatprep.subr.bf16.mxu0 %v4517_v0  ;;  %v4569_v0 = vld [vmem:[%s6404_s1 + $0x820] ss:$8 sps:$4 sm:$0xff]  }
  0xfd   :  { %3097 = vmatprep.subr.bf16.mxu1 %v4520_v1  ;;  %v4572_v1 = vld [vmem:[%s6404_s1 + $0x920] ss:$8 sps:$4 sm:$0xff]  }
  0xff   :  { %3017 = vmatpush2.bf16.msra.mxu0 %v4515_v2 }
 0x100   :  { %3098 = vmatpush2.bf16.msra.mxu1 %v4518_v3  ;;  %3148 = vmatprep.subr.bf16.mxu0 %v4529_v4  ;;  %v4580_v3 = vld [vmem:[%s6404_s1 + $0x814] ss:$8 sps:$4 sm:$0xff]  }
 0x101   :  { %3229 = vmatprep.subr.bf16.mxu1 %v4532_v5  ;;  %v4583_v4 = vld [vmem:[%s6404_s1 + $0x914] ss:$8 sps:$4 sm:$0xff]  }
 0x102   :  { %v2534_v14 = vpop.f32.mrf.mxu0  ;;  %3019 = vmatmul.mubr.bf16.vlgmr.msra.gmra.mxu0 %v4521_v6 }
 0x103   :  { %v2615_v15 = vpop.f32.mrf.mxu1  ;;  %3100 = vmatmul.mubr.bf16.vlgmr.msra.gmra.mxu1 %v4524_v7  ;;  %3149 = vmatpush1.bf16.msra.mxu0 %v4527_v8  ;;  %v4577_v7 = vld [vmem:[%s6405_s0 + $0x210] ss:$80 sps:$4 sm:$0xff]  }
 0x104   :  { %v5699_v18 = vadd.f32 %v2615_v15, %v2534_v14  ;;  %3230 = vmatpush1.bf16.msra.mxu1 %v4530_v9  ;;  %v2536_v20 = vpop.f32.mrf.mxu0  ;;  %3150 = vmatprep.subr.bf16.mxu0 %v4535_v10  ;;  %v4586_v9 = vld [vmem:[%s6405_s0 + $0x218] ss:$80 sps:$4 sm:$0xff]   ;;  %v106_v10 = vld [vmem:[%s6405_s0 + $0x2b0] sm:$0xff] }
 0x105   :  { %v2617_v21 = vpop.f32.mrf.mxu1  ;;  %3231 = vmatprep.subr.bf16.mxu1 %v4538_v11  ;;  %3028 = vmatprep.mubr.bf16.mxu0 %v4539_v12  ;;  %v107_v11 = vld [vmem:[%s6405_s0 + $0x2b8] sm:$0xff] }
 0x106   :  { %v5707_v23 = vadd.f32 %v2617_v21, %v2536_v20  ;;  %3109 = vmatprep.mubr.bf16.mxu1 %v4548_v13  ;;  %v2538_v25 = vpop.f32.mrf.mxu0  ;;  %v4578_v14 = vld [vmem:[%s6404_s1 + $0x810] ss:$8 sps:$4 sm:$0xff]  }
 0x107   :  { %v2619_v26 = vpop.f32.mrf.mxu1  ;;  %3151 = vmatpush1.bf16.msra.mxu0 %v4533_v16  ;;  %v4581_v15 = vld [vmem:[%s6404_s1 + $0x910] ss:$8 sps:$4 sm:$0xff]  }
 0x108   :  { %v5721_v30 = vadd.f32 %v2619_v26, %v2538_v25  ;;  %3232 = vmatpush1.bf16.msra.mxu1 %v4536_v17  ;;  %v2540_v32 = vpop.f32.mrf.mxu0  ;;  %3152 = vmatprep.subr.bf16.mxu0 %v4544_v19  ;;  %v4589_v17 = vld [vmem:[%s6404_s1 + $0x804] ss:$8 sps:$4 sm:$0xff]  }
 0x109   :  { %v2621_v33 = vpop.f32.mrf.mxu1  ;;  %3233 = vmatprep.subr.bf16.mxu1 %v4547_v22  ;;  %v4592_v19 = vld [vmem:[%s6404_s1 + $0x904] ss:$8 sps:$4 sm:$0xff]   ;;  %v3720_v22 = vcombine.high %v106_v10, %v106_v10 }
 0x10a   :  { %v5729_v35 = vadd.f32 %v2621_v33, %v2540_v32  ;;  %3029 = vmatmul.mubr.bf16.gmra.mxu0 %v4541_v24  ;;  %v2544_v39 = vpop.f32.mrf.mxu0  ;;  %v3722_v24 = vcombine.high %v107_v11, %v107_v11  ;;  %v4597_v32 = vld [vmem:[%s6404_s1 + $0x8f4] ss:$8 sps:$4 sm:$0xff]  }
 0x10b   :  { %3110 = vmatmul.mubr.bf16.gmra.mxu1 %v4550_v29  ;;  %v2625_v40 = vpop.f32.mrf.mxu1  ;;  %3153 = vmatpush1.bf16.msra.mxu0 %v4542_v27  ;;  %v4590_v29 = vld [vmem:[%s6404_s1 + $0x900] ss:$8 sps:$4 sm:$0xff]   ;;  %v4600_v33 = vld [vmem:[%s6404_s1 + $0x9f4] ss:$8 sps:$4 sm:$0xff]  }
 0x10c   :  { %3234 = vmatpush1.bf16.msra.mxu1 %v4545_v28  ;;  %v5743_v42 = vadd.f32 %v2625_v40, %v2544_v39  ;;  %3154 = vmatprep.subr.bf16.mxu0 %v4553_v31  ;;  %v2546_v45 = vpop.f32.mrf.mxu0  ;;  %v4587_v28 = vld [vmem:[%s6404_s1 + $0x800] ss:$8 sps:$4 sm:$0xff]   ;;  %v3721_v39 = vcombine.low %v107_v11, %v107_v11 }
 0x10d   :  { %3235 = vmatprep.subr.bf16.mxu1 %v4556_v34  ;;  %v2627_v46 = vpop.f32.mrf.mxu1  ;;  %3038 = vmatprep.mubr.bf16.mxu0 %v4557_v36 }
 0x10e   :  { %3119 = vmatprep.mubr.bf16.mxu1 %v4566_v37  ;;  %v5751_v47 = vadd.f32 %v2627_v46, %v2546_v45  ;;  %v2548_v50 = vpop.f32.mrf.mxu0  ;;  %v4605_v46 = vld [vmem:[%s6404_s1 + $0x8e4] ss:$8 sps:$4 sm:$0xff]  }
 0x10f   :  { %v2629_v51 = vpop.f32.mrf.mxu1  ;;  %3155 = vmatpush1.bf16.msra.mxu0 %v4551_v38  ;;  %v3719_v38 = vcombine.low %v106_v10, %v106_v10 }
 0x110   :  { %3236 = vmatpush1.bf16.msra.mxu1 %v4554_v41  ;;  %v5765_v54 = vadd.f32 %v2629_v51, %v2548_v50  ;;  %3156 = vmatprep.subr.bf16.mxu0 %v4562_v43  ;;  %v2550_v57 = vpop.f32.mrf.mxu0  ;;  %v4595_v43 = vld [vmem:[%s6404_s1 + $0x8f0] ss:$8 sps:$4 sm:$0xff]  }
 0x111   :  { %3237 = vmatprep.subr.bf16.mxu1 %v4565_v44  ;;  %v2631_v58 = vpop.f32.mrf.mxu1  ;;  %v4598_v44 = vld [vmem:[%s6404_s1 + $0x9f0] ss:$8 sps:$4 sm:$0xff]  }
 0x112   :  { %v5779_v61 = vadd.f32 %v2631_v58, %v2550_v57  ;;  %3039 = vmatmul.mubr.bf16.gmra.mxu0 %v4559_v48  ;;  %v2554_v62 = vpop.f32.mrf.mxu0  ;;  %v4608_v48 = vld [vmem:[%s6404_s1 + $0x9e4] ss:$8 sps:$4 sm:$0xff]   ;;  %v4603_v57 = vld [vmem:[%s6404_s1 + $0x8e0] ss:$8 sps:$4 sm:$0xff]  }
 0x113   :  { %3120 = vmatmul.mubr.bf16.gmra.mxu1 %v4568_v49  ;;  %v2635_v63 = vpop.f32.mrf.mxu1  ;;  %3157 = vmatpush1.bf16.msra.mxu0 %v4560_v52  ;;  %v4647_v52 = vld [vmem:[%s6405_s0 + $0x44] ss:$80 sps:$4 sm:$0xff]   ;;  %v4606_v58 = vld [vmem:[%s6404_s1 + $0x9e0] ss:$8 sps:$4 sm:$0xff]  }
 0x114   :  { %3238 = vmatpush1.bf16.msra.mxu1 %v4563_v53  ;;  %v5787_v2 = vadd.f32 %v2635_v63, %v2554_v62  ;;  %3158 = vmatprep.subr.bf16.mxu0 %v4571_v55  ;;  %v2556_v5 = vpop.f32.mrf.mxu0  ;;  %v4650_v53 = vld [vmem:[%s6405_s0 + $0x4c] ss:$80 sps:$4 sm:$0xff]  }
 0x115   :  { %3239 = vmatprep.subr.bf16.mxu1 %v4574_v56  ;;  %v2637_v6 = vpop.f32.mrf.mxu1  ;;  %3048 = vmatprep.mubr.bf16.mxu0 %v4575_v59  ;;  %v4614_v62 = vld [vmem:[%s6404_s1 + $0x9d4] ss:$8 sps:$4 sm:$0xff]  }
 0x116   :  { %3129 = vmatprep.mubr.bf16.mxu1 %v4584_v60  ;;  %v5798_v8 = vadd.f32 %v2637_v6, %v2556_v5  ;;  %v2558_v12 = vpop.f32.mrf.mxu0  ;;  %v4611_v60 = vld [vmem:[%s6404_s1 + $0x8d4] ss:$8 sps:$4 sm:$0xff]   ;;  %v4609_v5 = vld [vmem:[%s6404_s1 + $0x8d0] ss:$8 sps:$4 sm:$0xff]  }
 0x117   :  { %v2639_v13 = vpop.f32.mrf.mxu1  ;;  %3159 = vmatpush1.bf16.msra.mxu0 %v4569_v0  ;;  %v4612_v6 = vld [vmem:[%s6404_s1 + $0x9d0] ss:$8 sps:$4 sm:$0xff]  }
 0x118   :  { %3240 = vmatpush1.bf16.msra.mxu1 %v4572_v1  ;;  %v5815_v16 = vadd.f32 %v2639_v13, %v2558_v12  ;;  %3160 = vmatprep.subr.bf16.mxu0 %v4580_v3  ;;  %v2560_v20 = vpop.f32.mrf.mxu0  ;;  %v4615_v12 = vld [vmem:[%s6404_s1 + $0x8c0] ss:$8 sps:$4 sm:$0xff]  }
 0x119   :  { %3241 = vmatprep.subr.bf16.mxu1 %v4583_v4  ;;  %v2641_v21 = vpop.f32.mrf.mxu1  ;;  %v4618_v13 = vld [vmem:[%s6404_s1 + $0x9c0] ss:$8 sps:$4 sm:$0xff]  }
 0x11a   :  { %v5823_v25 = vadd.f32 %v2641_v21, %v2560_v20  ;;  %3049 = vmatmul.mubr.bf16.gmra.mxu0 %v4577_v7  ;;  %v2564_v26 = vpop.f32.mrf.mxu0  ;;  %v4617_v7 = vld [vmem:[%s6404_s1 + $0x8c4] ss:$8 sps:$4 sm:$0xff]  }
 0x11b   :  { %3130 = vmatmul.mubr.bf16.gmra.mxu1 %v4586_v9  ;;  %v2645_v27 = vpop.f32.mrf.mxu1  ;;  %3161 = vmatpush1.bf16.msra.mxu0 %v4578_v14  ;;  %v4620_v9 = vld [vmem:[%s6404_s1 + $0x9c4] ss:$8 sps:$4 sm:$0xff]   ;;  %v4623_v14 = vld [vmem:[%s6404_s1 + $0x8b4] ss:$8 sps:$4 sm:$0xff]  }
 0x11c   :  { %3242 = vmatpush1.bf16.msra.mxu1 %v4581_v15  ;;  %v5831_v31 = vadd.f32 %v2645_v27, %v2564_v26  ;;  %3162 = vmatprep.subr.bf16.mxu0 %v4589_v17  ;;  %v2566_v34 = vpop.f32.mrf.mxu0  ;;  %v4626_v15 = vld [vmem:[%s6404_s1 + $0x9b4] ss:$8 sps:$4 sm:$0xff]   ;;  %v4621_v17 = vld [vmem:[%s6404_s1 + $0x8b0] ss:$8 sps:$4 sm:$0xff]   ;;  %v4629_v20 = vld [vmem:[%s6404_s1 + $0x8a4] ss:$8 sps:$4 sm:$0xff]  }
 0x11d   :  { %3243 = vmatprep.subr.bf16.mxu1 %v4592_v19  ;;  %v2647_v36 = vpop.f32.mrf.mxu1  ;;  %3058 = vmatprep.mubr.bf16.mxu0 %v3720_v22  ;;  %v4624_v19 = vld [vmem:[%s6404_s1 + $0x9b0] ss:$8 sps:$4 sm:$0xff]   ;;  %v4632_v21 = vld [vmem:[%s6404_s1 + $0x9a4] ss:$8 sps:$4 sm:$0xff]   ;;  %v4627_v22 = vld [vmem:[%s6404_s1 + $0x8a0] ss:$8 sps:$4 sm:$0xff]  }
 0x11e   :  { %3139 = vmatprep.mubr.bf16.mxu1 %v3722_v24  ;;  %v5839_v37 = vadd.f32 %v2647_v36, %v2566_v34  ;;  %v2568_v40 = vpop.f32.mrf.mxu0  ;;  %v4630_v24 = vld [vmem:[%s6404_s1 + $0x9a0] ss:$8 sps:$4 sm:$0xff]   ;;  %v4635_v26 = vld [vmem:[%s6404_s1 + $0x894] ss:$8 sps:$4 sm:$0xff]  }
 0x11f   :  { %v2649_v41 = vpop.f32.mrf.mxu1  ;;  %3163 = vmatpush1.bf16.msra.mxu0 %v4587_v28  ;;  %v4638_v27 = vld [vmem:[%s6404_s1 + $0x994] ss:$8 sps:$4 sm:$0xff]   ;;  %v4633_v28 = vld [vmem:[%s6404_s1 + $0x890] ss:$8 sps:$4 sm:$0xff]   ;;  %v4639_v34 = vld [vmem:[%s6404_s1 + $0x880] ss:$8 sps:$4 sm:$0xff]  }
 0x120   :  { %3244 = vmatpush1.bf16.msra.mxu1 %v4590_v29  ;;  %v5847_v45 = vadd.f32 %v2649_v41, %v2568_v40  ;;  %3164 = vmatprep.subr.bf16.mxu0 %v4597_v32  ;;  %v2570_v49 = vpop.f32.mrf.mxu0  ;;  %v4636_v29 = vld [vmem:[%s6404_s1 + $0x990] ss:$8 sps:$4 sm:$0xff]   ;;  %v4641_v32 = vld [vmem:[%s6404_s1 + $0x884] ss:$8 sps:$4 sm:$0xff]   ;;  %v4642_v36 = vld [vmem:[%s6404_s1 + $0x980] ss:$8 sps:$4 sm:$0xff]  }
 0x121   :  { %3245 = vmatprep.subr.bf16.mxu1 %v4600_v33  ;;  %v2651_v50 = vpop.f32.mrf.mxu1  ;;  %v4644_v33 = vld [vmem:[%s6404_s1 + $0x984] ss:$8 sps:$4 sm:$0xff]  }
 0x122   :  { %v5855_v51 = vadd.f32 %v2651_v50, %v2570_v49  ;;  %3059 = vmatmul.mubr.bf16.gmra.mxu0 %v3719_v38  ;;  %v2574_v55 = vpop.f32.mrf.mxu0  ;;  %v4645_v38 = vld [vmem:[%s6405_s0 + $0x40] ss:$80 sps:$4 sm:$0xff]   ;;  %v4651_v40 = vld [vmem:[%s6405_s0 + $0xe4] ss:$80 sps:$4 sm:$0xff]   ;;  %v4653_v41 = vld [vmem:[%s6405_s0 + $0xec] ss:$80 sps:$4 sm:$0xff]  }
 0x123   :  { %3140 = vmatmul.mubr.bf16.gmra.mxu1 %v3721_v39  ;;  %v2655_v56 = vpop.f32.mrf.mxu1  ;;  %3165 = vmatpush2.bf16.msra.mxu0 %v4595_v43  ;;  %v4648_v39 = vld [vmem:[%s6405_s0 + $0x48] ss:$80 sps:$4 sm:$0xff]  }
 0x124   :  { %3246 = vmatpush2.bf16.msra.mxu1 %v4598_v44  ;;  %v5869_v59 = vadd.f32 %v2655_v56, %v2574_v55  ;;  %3166 = vmatprep.subr.bf16.mxu0 %v4605_v46  ;;  %v2576_v63 = vpop.f32.mrf.mxu0  ;;  %v4655_v56 = vld [vmem:[%s6405_s0 + $0xe0] ss:$80 sps:$4 sm:$0xff]  }
 0x125   :  { %3247 = vmatprep.subr.bf16.mxu1 %v4608_v48  ;;  %v2657_v0 = vpop.f32.mrf.mxu1  ;;  %3180 = vmatprep.mubr.bf16.mxu0 %v4647_v52 }
 0x126   :  { %v5877_v1 = vadd.f32 %v2657_v0, %v2576_v63  ;;  %3261 = vmatprep.mubr.bf16.mxu1 %v4650_v53  ;;  %v2578_v3 = vpop.f32.mrf.mxu0 }
 0x127   :  { %v2659_v4 = vpop.f32.mrf.mxu1  ;;  %3167 = vmatpush2.bf16.msra.mxu0 %v4603_v57  ;;  %v4656_v57 = vld [vmem:[%s6405_s0 + $0xe8] ss:$80 sps:$4 sm:$0xff]  }
 0x128   :  { %3248 = vmatpush2.bf16.msra.mxu1 %v4606_v58  ;;  %3168 = vmatprep.subr.bf16.mxu0 %v4611_v60  ;;  %v2579_v10 = vpop.f32.mrf.mxu0  ;;  %v4657_v60 = vld [vmem:[%s6405_s0 + $0x184] ss:$80 sps:$4 sm:$0xff]  }
 0x129   :  { %3249 = vmatprep.subr.bf16.mxu1 %v4614_v62  ;;  %v2660_v11 = vpop.f32.mrf.mxu1 }
 0x12b   :  { %3169 = vmatpush2.bf16.msra.mxu0 %v4609_v5 }
 0x12c   :  { %3250 = vmatpush2.bf16.msra.mxu1 %v4612_v6  ;;  %3170 = vmatprep.subr.bf16.mxu0 %v4617_v7 }
 0x12d   :  { %3251 = vmatprep.subr.bf16.mxu1 %v4620_v9 }
 0x12f   :  { %3171 = vmatpush2.bf16.msra.mxu0 %v4615_v12 }
 0x130   :  { %3252 = vmatpush2.bf16.msra.mxu1 %v4618_v13  ;;  %3172 = vmatprep.subr.bf16.mxu0 %v4623_v14  ;;  %v4662_v14 = vld [vmem:[%s6405_s0 + $0x188] ss:$80 sps:$4 sm:$0xff]  }
 0x131   :  { %3253 = vmatprep.subr.bf16.mxu1 %v4626_v15 }
 0x133   :  { %3173 = vmatpush2.bf16.msra.mxu0 %v4621_v17  ;;  %v4666_v17 = vld [vmem:[%s6405_s0 + $0x22c] ss:$80 sps:$4 sm:$0xff]  }
 0x134   :  { %3254 = vmatpush2.bf16.msra.mxu1 %v4624_v19  ;;  %3174 = vmatprep.subr.bf16.mxu0 %v4629_v20 }
 0x135   :  { %3255 = vmatprep.subr.bf16.mxu1 %v4632_v21 }
 0x137   :  { %3175 = vmatpush2.bf16.msra.mxu0 %v4627_v22 }
 0x138   :  { %3256 = vmatpush2.bf16.msra.mxu1 %v4630_v24  ;;  %3176 = vmatprep.subr.bf16.mxu0 %v4635_v26 }
 0x139   :  { %3257 = vmatprep.subr.bf16.mxu1 %v4638_v27 }
 0x13b   :  { %3177 = vmatpush2.bf16.msra.mxu0 %v4633_v28 }
 0x13c   :  { %3258 = vmatpush2.bf16.msra.mxu1 %v4636_v29  ;;  %3178 = vmatprep.subr.bf16.mxu0 %v4641_v32  ;;  %v108_v32 = vld [vmem:[%s6405_s0 + $0x2c0] sm:$0xff] }
 0x13d   :  { %3259 = vmatprep.subr.bf16.mxu1 %v4644_v33 }
 0x13f   :  { %3179 = vmatpush2.bf16.msra.mxu0 %v4639_v34 }
 0x140   :  { %3260 = vmatpush2.bf16.msra.mxu1 %v4642_v36 }
 0x142   :  { %v2696_v43 = vpop.f32.mrf.mxu0  ;;  %3181 = vmatmul.mubr.bf16.vlgmr.msra.gmra.mxu0 %v4645_v38  ;;  %v4665_v38 = vld [vmem:[%s6405_s0 + $0x220] ss:$80 sps:$4 sm:$0xff]  }
 0x143   :  { %v2777_v44 = vpop.f32.mrf.mxu1  ;;  %3262 = vmatmul.mubr.bf16.vlgmr.msra.gmra.mxu1 %v4648_v39  ;;  %v2697_v46 = vadd.f32 %v2696_v43, %v5699_v18  ;;  %3190 = vmatprep.mubr.bf16.mxu0 %v4651_v40  ;;  %v4668_v39 = vld [vmem:[%s6405_s0 + $0x228] ss:$80 sps:$4 sm:$0xff]   ;;  %v3724_v43 = vcombine.high %v108_v32, %v108_v32 }
 0x144   :  { %3271 = vmatprep.mubr.bf16.mxu1 %v4653_v41  ;;  %v2698_v48 = vpop.f32.mrf.mxu0 }
 0x145   :  { %v2779_v49 = vpop.f32.mrf.mxu1  ;;  %v5958_v50 = vadd.f32 %v2777_v44, %v2697_v46  ;;  %v2699_v52 = vadd.f32 %v2698_v48, %v5707_v23  ;;  %v4660_v23 = vld [vmem:[%s6405_s0 + $0x18c] ss:$80 sps:$4 sm:$0xff]  }
 0x146   :  { %v2700_v53 = vpop.f32.mrf.mxu0 }
 0x147   :  { %v2781_v55 = vpop.f32.mrf.mxu1  ;;  %v5967_v58 = vadd.f32 %v2779_v49, %v2699_v52  ;;  %v2701_v18 = vadd.f32 %v2700_v53, %v5721_v30 }
 0x148   :  { %v2702_v62 = vpop.f32.mrf.mxu0 }
 0x149   :  { %v2783_v63 = vpop.f32.mrf.mxu1  ;;  %v5976_v0 = vadd.f32 %v2781_v55, %v2701_v18  ;;  %v2703_v3 = vadd.f32 %v2702_v62, %v5729_v35  ;;  %v4659_v35 = vld [vmem:[%s6405_s0 + $0x180] ss:$80 sps:$4 sm:$0xff]   ;;  %v3723_v62 = vcombine.low %v108_v32, %v108_v32 }
 0x14a   :  { %v2706_v4 = vpop.f32.mrf.mxu0  ;;  %3191 = vmatmul.mubr.bf16.gmra.mxu0 %v4655_v56 }
 0x14b   :  { %3272 = vmatmul.mubr.bf16.gmra.mxu1 %v4656_v57  ;;  %v2787_v5 = vpop.f32.mrf.mxu1  ;;  %v5979_v6 = vadd.f32 %v2783_v63, %v2703_v3  ;;  %v2707_v30 = vadd.f32 %v2706_v4, %v5743_v42  ;;  %3200 = vmatprep.mubr.bf16.mxu0 %v4657_v60 }
 0x14c   :  { %3281 = vmatprep.mubr.bf16.mxu1 %v4660_v23  ;;  %v2708_v7 = vpop.f32.mrf.mxu0 }
 0x14d   :  { %v2789_v9 = vpop.f32.mrf.mxu1  ;;  %v2709_v10 = vadd.f32 %v2708_v7, %v5751_v47  ;;  %v5983_v11 = vadd.f32 %v2787_v5, %v2707_v30  ;;  %v4663_v47 = vld [vmem:[%s6405_s0 + $0x224] ss:$80 sps:$4 sm:$0xff]  }
 0x14e   :  { %v2710_v12 = vpop.f32.mrf.mxu0 }
 0x14f   :  { %v2791_v13 = vpop.f32.mrf.mxu1  ;;  %v2711_v42 = vadd.f32 %v2710_v12, %v5765_v54  ;;  %v5992_v15 = vadd.f32 %v2789_v9, %v2709_v10 }
 0x150   :  { %v2712_v19 = vpop.f32.mrf.mxu0 }
 0x151   :  { %v2793_v20 = vpop.f32.mrf.mxu1  ;;  %v2713_v21 = vadd.f32 %v2712_v19, %v5779_v61  ;;  %v6001_v22 = vadd.f32 %v2791_v13, %v2711_v42  ;;  %v109_v61 = vld [vmem:[%s6405_s0 + $0x2c8] sm:$0xff]  ;;  %s4693_s0 = smov 125  }
 0x152   :  { %v2716_v24 = vpop.f32.mrf.mxu0  ;;  %3201 = vmatmul.mubr.bf16.gmra.mxu0 %v4659_v35  ;;  %v3726_v44 = vcombine.high %v109_v61, %v109_v61  ;;  %v3725_v63 = vcombine.low %v109_v61, %v109_v61 }
 0x153   :  { %v2797_v26 = vpop.f32.mrf.mxu1  ;;  %3282 = vmatmul.mubr.bf16.gmra.mxu1 %v4662_v14  ;;  %v2717_v54 = vadd.f32 %v2716_v24, %v5787_v2  ;;  %v6004_v27 = vadd.f32 %v2793_v20, %v2713_v21  ;;  %3210 = vmatprep.mubr.bf16.mxu0 %v4663_v47 }
 0x154   :  { %3291 = vmatprep.mubr.bf16.mxu1 %v4666_v17  ;;  %v2718_v28 = vpop.f32.mrf.mxu0 }
 0x155   :  { %v2799_v29 = vpop.f32.mrf.mxu1  ;;  %v2719_v33 = vadd.f32 %v2718_v28, %v5798_v8  ;;  %v6013_v34 = vadd.f32 %v2797_v26, %v2717_v54 }
 0x156   :  { %v2720_v36 = vpop.f32.mrf.mxu0 }
 0x157   :  { %v2801_v2 = vpop.f32.mrf.mxu1  ;;  %v2721_v40 = vadd.f32 %v2720_v36, %v5815_v16  ;;  %v6022_v41 = vadd.f32 %v2799_v29, %v2719_v33 }
 0x158   :  { %v2722_v46 = vpop.f32.mrf.mxu0 }
 0x159   :  { %v2803_v8 = vpop.f32.mrf.mxu1  ;;  %v2723_v48 = vadd.f32 %v2722_v46, %v5823_v25  ;;  %v6025_v49 = vadd.f32 %v2801_v2, %v2721_v40 }
 0x15a   :  { %v2726_v52 = vpop.f32.mrf.mxu0  ;;  %3211 = vmatmul.mubr.bf16.gmra.mxu0 %v4665_v38 }
 0x15b   :  { %v2807_v53 = vpop.f32.mrf.mxu1  ;;  %3292 = vmatmul.mubr.bf16.gmra.mxu1 %v4668_v39  ;;  %v2727_v55 = vadd.f32 %v2726_v52, %v5831_v31  ;;  %v6028_v56 = vadd.f32 %v2803_v8, %v2723_v48  ;;  %3220 = vmatprep.mubr.bf16.mxu0 %v3724_v43 }
 0x15c   :  { %3301 = vmatprep.mubr.bf16.mxu1 %v3726_v44  ;;  %v2728_v16 = vpop.f32.mrf.mxu0 }
 0x15d   :  { %v2809_v57 = vpop.f32.mrf.mxu1  ;;  %v2729_v18 = vadd.f32 %v2728_v16, %v5839_v37  ;;  %v6031_v60 = vadd.f32 %v2807_v53, %v2727_v55 }
 0x15e   :  { %v2730_v23 = vpop.f32.mrf.mxu0 }
 0x15f   :  { %v2811_v25 = vpop.f32.mrf.mxu1  ;;  %v2731_v3 = vadd.f32 %v2730_v23, %v5847_v45  ;;  %v6034_v4 = vadd.f32 %v2809_v57, %v2729_v18 }
 0x160   :  { %v2732_v5 = vpop.f32.mrf.mxu0 }
 0x161   :  { %v2813_v31 = vpop.f32.mrf.mxu1  ;;  %v2733_v30 = vadd.f32 %v2732_v5, %v5855_v51  ;;  %v6037_v7 = vadd.f32 %v2811_v25, %v2731_v3 }
 0x162   :  { %v2736_v9 = vpop.f32.mrf.mxu0  ;;  %3221 = vmatmul.mubr.bf16.gmra.mxu0 %v3723_v62 }
 0x163   :  { %v2817_v10 = vpop.f32.mrf.mxu1  ;;  %3302 = vmatmul.mubr.bf16.gmra.mxu1 %v3725_v63  ;;  %v2737_v37 = vadd.f32 %v2736_v9, %v5869_v59  ;;  %v6040_v12 = vadd.f32 %v2813_v31, %v2733_v30 }
 0x164   :  { %v2738_v13 = vpop.f32.mrf.mxu0 }
 0x165   :  { %v2819_v35 = vpop.f32.mrf.mxu1  ;;  %v2739_v45 = vadd.f32 %v2738_v13, %v5877_v1  ;;  %v6043_v14 = vadd.f32 %v2817_v10, %v2737_v37 }
 0x166   :  { %v2740_v42 = vpop.f32.mrf.mxu0 }
 0x167   :  { %v2821_v47 = vpop.f32.mrf.mxu1  ;;  %v6045_v17 = vadd.f32 %v2819_v35, %v2739_v45 }
 0x168   :  { %v2741_v51 = vpop.f32.mrf.mxu0 }
 0x169   :  { %v2822_v19 = vpop.f32.mrf.mxu1 }
 0x182   :  { %v2858_v20 = vpop.f32.mrf.mxu0 }
 0x183   :  { %v2939_v21 = vpop.f32.mrf.mxu1  ;;  %v2859_v24 = vadd.f32 %v2858_v20, %v5958_v50 }
 0x184   :  { %v2860_v26 = vpop.f32.mrf.mxu0 }
 0x185   :  { %v2941_v59 = vpop.f32.mrf.mxu1  ;;  %v6048_v54 = vadd.f32 %v2939_v21, %v2859_v24  ;;  %v2861_v28 = vadd.f32 %v2860_v26, %v5967_v58 }
 0x186   :  { %v2862_v29 = vpop.f32.mrf.mxu0 }
 0x187   :  { %v2943_v1 = vpop.f32.mrf.mxu1  ;;  %v6051_v32 = vadd.f32 %v2941_v59, %v2861_v28  ;;  %v2863_v61 = vadd.f32 %v2862_v29, %v5976_v0 }
 0x188   :  { %v2864_v33 = vpop.f32.mrf.mxu0 }
 0x189   :  { %v2945_v36 = vpop.f32.mrf.mxu1  ;;  %v6054_v2 = vadd.f32 %v2943_v1, %v2863_v61  ;;  %v2865_v38 = vadd.f32 %v2864_v33, %v5979_v6 }
 0x18a   :  { %v2868_v39 = vpop.f32.mrf.mxu0 }
 0x18b   :  { %v2949_v50 = vpop.f32.mrf.mxu1  ;;  %v6057_v40 = vadd.f32 %v2945_v36, %v2865_v38  ;;  %v2869_v43 = vadd.f32 %v2868_v39, %v5983_v11 }
 0x18c   :  { %v2870_v44 = vpop.f32.mrf.mxu0 }
 0x18d   :  { %v2951_v58 = vpop.f32.mrf.mxu1  ;;  %v2871_v46 = vadd.f32 %v2870_v44, %v5992_v15  ;;  %v6061_v8 = vadd.f32 %v2949_v50, %v2869_v43 }
 0x18e   :  { %v2872_v48 = vpop.f32.mrf.mxu0 }
 0x18f   :  { %v2953_v0 = vpop.f32.mrf.mxu1  ;;  %v2873_v52 = vadd.f32 %v2872_v48, %v6001_v22  ;;  %v6064_v53 = vadd.f32 %v2951_v58, %v2871_v46 }
 0x190   :  { %v2874_v55 = vpop.f32.mrf.mxu0 }
 0x191   :  { %v2955_v6 = vpop.f32.mrf.mxu1  ;;  %v2875_v16 = vadd.f32 %v2874_v55, %v6004_v27  ;;  %v6067_v57 = vadd.f32 %v2953_v0, %v2873_v52 }
 0x192   :  { %v2878_v18 = vpop.f32.mrf.mxu0 }
 0x193   :  { %v2959_v11 = vpop.f32.mrf.mxu1  ;;  %v2879_v23 = vadd.f32 %v2878_v18, %v6013_v34  ;;  %v6070_v25 = vadd.f32 %v2955_v6, %v2875_v16 }
 0x194   :  { %v2880_v15 = vpop.f32.mrf.mxu0 }
 0x195   :  { %v2961_v62 = vpop.f32.mrf.mxu1  ;;  %v2881_v63 = vadd.f32 %v2880_v15, %v6022_v41  ;;  %v6073_v3 = vadd.f32 %v2959_v11, %v2879_v23 }
 0x196   :  { %v2882_v22 = vpop.f32.mrf.mxu0 }
 0x197   :  { %v2963_v5 = vpop.f32.mrf.mxu1  ;;  %v2883_v31 = vadd.f32 %v2882_v22, %v6025_v49  ;;  %v6076_v30 = vadd.f32 %v2961_v62, %v2881_v63 }
 0x198   :  { %v2884_v27 = vpop.f32.mrf.mxu0 }
 0x199   :  { %v2965_v9 = vpop.f32.mrf.mxu1  ;;  %v2885_v10 = vadd.f32 %v2884_v27, %v6028_v56  ;;  %v6079_v37 = vadd.f32 %v2963_v5, %v2883_v31 }
 0x19a   :  { %v2888_v34 = vpop.f32.mrf.mxu0 }
 0x19b   :  { %v2969_v13 = vpop.f32.mrf.mxu1  ;;  %v2889_v35 = vadd.f32 %v2888_v34, %v6031_v60  ;;  %v6082_v45 = vadd.f32 %v2965_v9, %v2885_v10 }
 0x19c   :  { %v2890_v41 = vpop.f32.mrf.mxu0 }
 0x19d   :  { %v2971_v42 = vpop.f32.mrf.mxu1  ;;  %v2891_v47 = vadd.f32 %v2890_v41, %v6034_v4  ;;  %v6085_v51 = vadd.f32 %v2969_v13, %v2889_v35 }
 0x19e   :  { %v2892_v49 = vpop.f32.mrf.mxu0 }
 0x19f   :  { %v2973_v19 = vpop.f32.mrf.mxu1  ;;  %v2893_v20 = vadd.f32 %v2892_v49, %v6037_v7  ;;  %v6088_v21 = vadd.f32 %v2971_v42, %v2891_v47 }
 0x1a0   :  { %v2894_v56 = vpop.f32.mrf.mxu0 }
 0x1a1   :  { %v2975_v24 = vpop.f32.mrf.mxu1  ;;  %v2895_v26 = vadd.f32 %v2894_v56, %v6040_v12  ;;  %v6091_v59 = vadd.f32 %v2973_v19, %v2893_v20 }
 0x1a2   :  { %v2898_v60 = vpop.f32.mrf.mxu0 }
 0x1a3   :  { %v2979_v28 = vpop.f32.mrf.mxu1  ;;  %v2899_v29 = vadd.f32 %v2898_v60, %v6043_v14  ;;  %v6094_v1 = vadd.f32 %v2975_v24, %v2895_v26 }
 0x1a4   :  { %v2900_v4 = vpop.f32.mrf.mxu0 }
 0x1a5   :  { %v2981_v61 = vpop.f32.mrf.mxu1  ;;  %v2901_v33 = vadd.f32 %v2900_v4, %v6045_v17  ;;  %v6097_v36 = vadd.f32 %v2979_v28, %v2899_v29 }
 0x1a6   :  { %v2902_v7 = vpop.f32.mrf.mxu0 }
 0x1a7   :  { %v2983_v38 = vpop.f32.mrf.mxu1  ;;  %v6099_v39 = vadd.f32 %v2981_v61, %v2901_v33 }
 0x1a8   :  { %v2903_v50 = vpop.f32.mrf.mxu0 }
 0x1a9   :  { %v2984_v12 = vpop.f32.mrf.mxu1 }
 0x1c2   :  { %v3020_v43 = vpop.f32.mrf.mxu0 }
 0x1c3   :  { %v3101_v44 = vpop.f32.mrf.mxu1  ;;  %v3021_v58 = vadd.f32 %v3020_v43, %v6048_v54 }
 0x1c4   :  { %v6102_v46 = vpop.f32.mrf.mxu0 }
 0x1c5   :  { %v6104_v14 = vpop.f32.mrf.mxu1  ;;  %v6106_v48 = vadd.f32 %v3101_v44, %v3021_v58 }
 0x1c6   :  { %v3024_v0 = vpop.f32.mrf.mxu0 }
 0x1c7   :  { %v3105_v17 = vpop.f32.mrf.mxu1  ;;  %v3025_v52 = vadd.f32 %v3024_v0, %v6054_v2 }
 0x1c8   :  { %v6109_v55 = vpop.f32.mrf.mxu0 }
 0x1c9   :  { %v6111_v6 = vpop.f32.mrf.mxu1  ;;  %v6113_v16 = vadd.f32 %v3105_v17, %v3025_v52 }
 0x1ca   :  { %v3030_v18 = vpop.f32.mrf.mxu0 }
 0x1cb   :  { %v3111_v11 = vpop.f32.mrf.mxu1  ;;  %v3031_v54 = vadd.f32 %v3030_v18, %v6061_v8 }
 0x1cc   :  { %v6116_v23 = vpop.f32.mrf.mxu0 }
 0x1cd   :  { %v6118_v15 = vpop.f32.mrf.mxu1  ;;  %v6120_v62 = vadd.f32 %v3111_v11, %v3031_v54 }
 0x1ce   :  { %v3034_v63 = vpop.f32.mrf.mxu0 }
 0x1cf   :  { %v3115_v22 = vpop.f32.mrf.mxu1  ;;  %v3035_v2 = vadd.f32 %v3034_v63, %v6067_v57 }
 0x1d0   :  { %v3036_v5 = vpop.f32.mrf.mxu0 }
 0x1d1   :  { %v3117_v31 = vpop.f32.mrf.mxu1  ;;  %v3037_v27 = vadd.f32 %v3036_v5, %v6070_v25  ;;  %v6124_v9 = vadd.f32 %v3115_v22, %v3035_v2  ;;  %v3023_v2 = vadd.f32 %v6102_v46, %v6051_v32  ;;  %v3033_v32 = vadd.f32 %v6116_v23, %v6064_v53 }
 0x1d2   :  { %v3040_v10 = vpop.f32.mrf.mxu0 }
 0x1d3   :  { %v3121_v34 = vpop.f32.mrf.mxu1  ;;  %v3041_v8 = vadd.f32 %v3040_v10, %v6073_v3  ;;  %v6127_v13 = vadd.f32 %v3117_v31, %v3037_v27  ;;  %v3027_v27 = vadd.f32 %v6109_v55, %v6057_v40  ;;  %v3114_v53 = vadd.f32 %v6118_v15, %v3033_v32 }
 0x1d4   :  { %v3042_v35 = vpop.f32.mrf.mxu0 }
 0x1d5   :  { %v3123_v41 = vpop.f32.mrf.mxu1  ;;  %v3043_v42 = vadd.f32 %v3042_v35, %v6076_v30  ;;  %v6130_v47 = vadd.f32 %v3121_v34, %v3041_v8 }
 0x1d6   :  { %v3044_v49 = vpop.f32.mrf.mxu0 }
 0x1d7   :  { %v3125_v57 = vpop.f32.mrf.mxu1  ;;  %v3045_v19 = vadd.f32 %v3044_v49, %v6079_v37  ;;  %v6133_v20 = vadd.f32 %v3123_v41, %v3043_v42  ;;  %v3108_v49 = vadd.f32 %v6111_v6, %v3027_v27 }
 0x1d8   :  { %v3046_v25 = vpop.f32.mrf.mxu0 }
 0x1d9   :  { %v3127_v56 = vpop.f32.mrf.mxu1  ;;  %v3047_v24 = vadd.f32 %v3046_v25, %v6082_v45  ;;  %v6136_v26 = vadd.f32 %v3125_v57, %v3045_v19 }
 0x1da   :  { %v3050_v3 = vpop.f32.mrf.mxu0 }
 0x1db   :  { %v3131_v60 = vpop.f32.mrf.mxu1  ;;  %v3051_v28 = vadd.f32 %v3050_v3, %v6085_v51  ;;  %v6139_v29 = vadd.f32 %v3127_v56, %v3047_v24 }
 0x1dc   :  { %v3052_v30 = vpop.f32.mrf.mxu0 }
 0x1dd   :  { %v3133_v4 = vpop.f32.mrf.mxu1  ;;  %v3053_v61 = vadd.f32 %v3052_v30, %v6088_v21  ;;  %v6142_v33 = vadd.f32 %v3131_v60, %v3051_v28 }
 0x1de   :  { %v3054_v37 = vpop.f32.mrf.mxu0 }
 0x1df   :  { %v3135_v7 = vpop.f32.mrf.mxu1  ;;  %v3055_v38 = vadd.f32 %v3054_v37, %v6091_v59  ;;  %v6145_v50 = vadd.f32 %v3133_v4, %v3053_v61 }
 0x1e0   :  { %v3056_v45 = vpop.f32.mrf.mxu0 }
 0x1e1   :  { %v3137_v12 = vpop.f32.mrf.mxu1  ;;  %v3057_v43 = vadd.f32 %v3056_v45, %v6094_v1  ;;  %v6148_v44 = vadd.f32 %v3135_v7, %v3055_v38  ;;  %v4696_v7 = vmov 0  }
 0x1e2   :  { %v3060_v51 = vpop.f32.mrf.mxu0  ;;  %4051 = vset.pattern.permute.xlu1 %v4696_v7  ;;  %4052 = vset.pattern.permute.xlu0 %v4696_v7 }
 0x1e3   :  { %v3141_v58 = vpop.f32.mrf.mxu1  ;;  %v3061_v0 = vadd.f32 %v3060_v51, %v6097_v36  ;;  %v6151_v17 = vadd.f32 %v3137_v12, %v3057_v43  ;;  %v3104_v36 = vadd.f32 %v6104_v14, %v3023_v2 }
 0x1e4   :  { %v3062_v21 = vpop.f32.mrf.mxu0 }
 0x1e5   :  { %v3143_v52 = vpop.f32.mrf.mxu1  ;;  %v3063_v18 = vadd.f32 %v3062_v21, %v6099_v39  ;;  %v6154_v11 = vadd.f32 %v3141_v58, %v3061_v0 }
 0x1e6   :  { %v3064_v59 = vpop.f32.mrf.mxu0 }
 0x1e7   :  { %v3145_v54 = vpop.f32.mrf.mxu1  ;;  %v6156_v63 = vadd.f32 %v3143_v52, %v3063_v18 }
 0x1e8   :  { %v3065_v22 = vpop.f32.mrf.mxu0 }
 0x1e9   :  { %v3146_v1 = vpop.f32.mrf.mxu1 }
 0x202   :  { %v3182_v5 = vpop.f32.mrf.mxu0 }
 0x203   :  { %v3263_v31 = vpop.f32.mrf.mxu1  ;;  %v3183_v39 = vadd.f32 %v3182_v5, %v6106_v48 }
 0x204   :  { %v3184_v10 = vpop.f32.mrf.mxu0 }
 0x205   :  { %v3265_v34 = vpop.f32.mrf.mxu1  ;;  %v6164_v8 = vadd.f32 %v3263_v31, %v3183_v39  ;;  %v3185_v35 = vadd.f32 %v3184_v10, %v3104_v36 }
 0x206   :  { %v3186_v41 = vpop.f32.mrf.mxu0 }
 0x207   :  { %v3267_v42 = vpop.f32.mrf.mxu1  ;;  %v6169_v46 = vadd.f32 %v3265_v34, %v3185_v35  ;;  %v3187_v14 = vadd.f32 %v3186_v41, %v6113_v16  ;;  %v3325_v15 = vmul.f32 %v6164_v8, %v6164_v8 }
 0x208   :  { %v3188_v57 = vpop.f32.mrf.mxu0 }
 0x209   :  { %v3269_v40 = vpop.f32.mrf.mxu1  ;;  %v6172_v55 = vadd.f32 %v3267_v42, %v3187_v14  ;;  %v3189_v48 = vadd.f32 %v3188_v57, %v3108_v49  ;;  %3470 = vrot.lane.b32.xlu1 %v6169_v46, %s4693_s0  ;;  %3443 = vrot.lane.b32.xlu0 %v6169_v46, %s4694_s12 }
 0x20a   :  { %v3192_v6 = vpop.f32.mrf.mxu0 }
 0x20b   :  { %v3273_v19 = vpop.f32.mrf.mxu1  ;;  %v6179_v23 = vadd.f32 %v3269_v40, %v3189_v48  ;;  %v3193_v16 = vadd.f32 %v3192_v6, %v6120_v62  ;;  %v3326_v25 = vmul.f32 %v6172_v55, %v6172_v55  ;;  %v3310_v30 = vadd.f32 %v6172_v55, %v6164_v8 }
 0x20c   :  { %v3194_v56 = vpop.f32.mrf.mxu0 }
 0x20d   :  { %v3275_v24 = vpop.f32.mrf.mxu1  ;;  %v6184_v3 = vadd.f32 %v3273_v19, %v3193_v16  ;;  %v3195_v60 = vadd.f32 %v3194_v56, %v3114_v53  ;;  %3508 = vrot.lane.b32.xlu1 %v6179_v23, %s4695_s13  ;;  %3506 = vrot.lane.b32.xlu0 %v6169_v46, %s4695_s13  ;;  %v3334_v38 = vadd.f32 %v3326_v25, %v3325_v15 }
 0x20e   :  { %v3196_v28 = vpop.f32.mrf.mxu0 }
 0x20f   :  { %v3277_v62 = vpop.f32.mrf.mxu1  ;;  %v3327_v4 = vmul.f32 %v6184_v3, %v6184_v3  ;;  %v6196_v61 = vadd.f32 %v3275_v24, %v3195_v60  ;;  %v3197_v37 = vadd.f32 %v3196_v28, %v6124_v9  ;;  %v3311_v43 = vadd.f32 %v3310_v30, %v6184_v3 }
 0x210   :  { %v3198_v45 = vpop.f32.mrf.mxu0 }
 0x211   :  { %v3279_v12 = vpop.f32.mrf.mxu1  ;;  %v6200_v51 = vadd.f32 %v3277_v62, %v3197_v37  ;;  %3447 = vrot.lane.b32.xlu1 %v6196_v61, %s4694_s12  ;;  %3445 = vrot.lane.b32.xlu0 %v6179_v23, %s4694_s12  ;;  %v3335_v58 = vadd.f32 %v3334_v38, %v3327_v4  ;;  %v3199_v18 = vadd.f32 %v3198_v45, %v6127_v13 }
 0x212   :  { %v3202_v0 = vpop.f32.mrf.mxu0 }
 0x213   :  { %v3283_v21 = vpop.f32.mrf.mxu1  ;;  %v3312_v9 = vadd.f32 %v3311_v43, %v6200_v51  ;;  %v3328_v52 = vmul.f32 %v6200_v51, %v6200_v51  ;;  %v3203_v59 = vadd.f32 %v3202_v0, %v6130_v47  ;;  %v6217_v36 = vadd.f32 %v3279_v12, %v3199_v18 }
 0x214   :  { %v3204_v54 = vpop.f32.mrf.mxu0 }
 0x215   :  { %v3285_v22 = vpop.f32.mrf.mxu1  ;;  %v3336_v1 = vadd.f32 %v3335_v58, %v3328_v52  ;;  %v6211_v2 = vadd.f32 %v3283_v21, %v3203_v59  ;;  %3474 = vrot.lane.b32.xlu1 %v6196_v61, %s4693_s0  ;;  %3472 = vrot.lane.b32.xlu0 %v6179_v23, %s4693_s0  ;;  %v3205_v41 = vadd.f32 %v3204_v54, %v6133_v20 }
 0x216   :  { %v3206_v5 = vpop.f32.mrf.mxu0 }
 0x217   :  { %v3287_v31 = vpop.f32.mrf.mxu1  ;;  %v3313_v27 = vadd.f32 %v3312_v9, %v6211_v2  ;;  %v3329_v13 = vmul.f32 %v6211_v2, %v6211_v2  ;;  %v3207_v47 = vadd.f32 %v3206_v5, %v6136_v26  ;;  %v6240_v20 = vadd.f32 %v3285_v22, %v3205_v41 }
 0x218   :  { %v3208_v39 = vpop.f32.mrf.mxu0 }
 0x219   :  { %v3289_v10 = vpop.f32.mrf.mxu1  ;;  %v3337_v34 = vadd.f32 %v3336_v1, %v3329_v13  ;;  %v6223_v35 = vadd.f32 %v3287_v31, %v3207_v47  ;;  %3449 = vrot.lane.b32.xlu1 %v6217_v36, %s4694_s12  ;;  %3510 = vrot.lane.b32.xlu0 %v6196_v61, %s4695_s13  ;;  %v3209_v16 = vadd.f32 %v3208_v39, %v6139_v29 }
 0x21a   :  { %v3212_v42 = vpop.f32.mrf.mxu0 }
 0x21b   :  { %v3293_v49 = vpop.f32.mrf.mxu1  ;;  %v3314_v32 = vadd.f32 %v3313_v27, %v6223_v35  ;;  %v3330_v26 = vmul.f32 %v6223_v35, %v6223_v35  ;;  %v3213_v14 = vadd.f32 %v3212_v42, %v6142_v33  ;;  %v6253_v30 = vadd.f32 %v3289_v10, %v3209_v16 }
 0x21c   :  { %v3214_v57 = vpop.f32.mrf.mxu0 }
 0x21d   :  { %v3295_v40 = vpop.f32.mrf.mxu1  ;;  %v3338_v48 = vadd.f32 %v3337_v34, %v3330_v26  ;;  %v6234_v6 = vadd.f32 %v3293_v49, %v3213_v14  ;;  %3512 = vrot.lane.b32.xlu1 %v6217_v36, %s4695_s13  ;;  %3476 = vrot.lane.b32.xlu0 %v6217_v36, %s4693_s0  ;;  %v3215_v0 = vadd.f32 %v3214_v57, %v6145_v50 }
 0x21e   :  { %v3216_v19 = vpop.f32.mrf.mxu0 }
 0x21f   :  { %v3297_v53 = vpop.f32.mrf.mxu1  ;;  %v3315_v25 = vadd.f32 %v3314_v32, %v6234_v6  ;;  %v3331_v33 = vmul.f32 %v6234_v6, %v6234_v6  ;;  %v3217_v56 = vadd.f32 %v3216_v19, %v6148_v44  ;;  %v6273_v54 = vadd.f32 %v3295_v40, %v3215_v0 }
 0x220   :  { %v3218_v24 = vpop.f32.mrf.mxu0 }
 0x221   :  { %v3299_v60 = vpop.f32.mrf.mxu1  ;;  %v3339_v15 = vadd.f32 %v3338_v48, %v3331_v33  ;;  %v6247_v28 = vadd.f32 %v3297_v53, %v3217_v56  ;;  %3478 = vrot.lane.b32.xlu1 %v6240_v20, %s4693_s0  ;;  %3451 = vrot.lane.b32.xlu0 %v6240_v20, %s4694_s12  ;;  %v3219_v22 = vadd.f32 %v3218_v24, %v6151_v17  ;;  %v3360_v48 = vlaneseq  ;;  %v3352_v53 = vld [vmem:[%s6406_s3] sm:$0x1] }
 0x222   :  { %v3222_v62 = vpop.f32.mrf.mxu0  ;;  %v3356_v56 = vld [vmem:[%s6407_s4] sm:$0x1] }
 0x223   :  { %v3303_v29 = vpop.f32.mrf.mxu1  ;;  %v3316_v4 = vadd.f32 %v3315_v25, %v6247_v28  ;;  %v3332_v44 = vmul.f32 %v6247_v28, %v6247_v28  ;;  %v3223_v37 = vadd.f32 %v3222_v62, %v6154_v11  ;;  %v6280_v27 = vadd.f32 %v3299_v60, %v3219_v22 }
 0x224   :  { %v3224_v7 = vpop.f32.mrf.mxu0  ;;  %v3361_v19 = vshrl.u32 %v3360_v48, 7  ;;  %v3402_v48 = vld [vmem:[%s6408_s2 + $0x20] sm:$0xff] }
 0x225   :  { %v3305_v38 = vpop.f32.mrf.mxu1  ;;  %v3340_v45 = vadd.f32 %v3339_v15, %v3332_v44  ;;  %v6259_v12 = vadd.f32 %v3303_v29, %v3223_v37  ;;  %3453 = vrot.lane.b32.xlu1 %v6253_v30, %s4694_s12  ;;  %3514 = vrot.lane.b32.xlu0 %v6240_v20, %s4695_s13  ;;  %v3225_v13 = vadd.f32 %v3224_v7, %v6156_v63  ;;  %vm3429_vm12 = vcmp.eq.s32.totalorder %v3402_v48, 2 }
 0x226   :  { %v3226_v43 = vpop.f32.mrf.mxu0  ;;  %v3362_v16 = vsub.s32 0, %v3361_v19  ;;  %vm3420_vm13 = vcmp.eq.s32.totalorder %v3402_v48, 1  ;;  %vm3411_vm14 = vcmp.eq.s32.totalorder %v3402_v48, 0 }
 0x227   :  { %v3307_v58 = vpop.f32.mrf.mxu1  ;;  %v3317_v21 = vadd.f32 %v3316_v4, %v6259_v12  ;;  %v3333_v11 = vmul.f32 %v6259_v12, %v6259_v12  ;;  %v6287_v42 = vadd.f32 %v3305_v38, %v3225_v13 }
 0x228   :  { %v3227_v9 = vpop.f32.mrf.mxu0 }
 0x229   :  { %v3308_v52 = vpop.f32.mrf.mxu1  ;;  %v3318_v18 = vrot.slane %v3317_v21, 4  ;;  %v3341_v59 = vadd.f32 %v3340_v45, %v3333_v11  ;;  %3516 = vrot.lane.b32.xlu1 %v6253_v30, %s4695_s13  ;;  %3480 = vrot.lane.b32.xlu0 %v6253_v30, %s4693_s0 }
 0x22b   :  { %v3319_v50 = vadd.f32 %v3318_v18, %v3317_v21  ;;  %v3342_v1 = vrot.slane %v3341_v59, 4 }
 0x22d   :  { %v3320_v5 = vrot.slane %v3319_v50, 2  ;;  %v3343_v31 = vadd.f32 %v3342_v1, %v3341_v59  ;;  %3482 = vrot.lane.b32.xlu1 %v6273_v54, %s4693_s0  ;;  %3455 = vrot.lane.b32.xlu0 %v6273_v54, %s4694_s12 }
 0x22f   :  { %v3321_v47 = vadd.f32 %v3320_v5, %v3319_v50  ;;  %v3344_v39 = vrot.slane %v3343_v31, 2  ;;  %v3399_v50 = vld [vmem:[%s6408_s2 + $0x8] sm:$0xff] }
 0x230   :  { %vm3426_vm3 = vcmp.eq.s32.totalorder %v3399_v50, 2  ;;  %vm3417_vm4 = vcmp.eq.s32.totalorder %v3399_v50, 1  ;;  %vm3408_vm5 = vcmp.eq.s32.totalorder %v3399_v50, 0 }
 0x231   :  { %v3322_v10 = vrot.slane %v3321_v47, 1  ;;  %v3345_v34 = vadd.f32 %v3344_v39, %v3343_v31  ;;  %3457 = vrot.lane.b32.xlu1 %v6280_v27, %s4694_s12  ;;  %3518 = vrot.lane.b32.xlu0 %v6273_v54, %s4695_s13  ;;  %v3400_v31 = vld [vmem:[%s6408_s2 + $0x10] sm:$0xff] }
 0x232   :  { %vm3427_vm6 = vcmp.eq.s32.totalorder %v3400_v31, 2  ;;  %vm3418_vm7 = vcmp.eq.s32.totalorder %v3400_v31, 1  ;;  %vm3409_vm8 = vcmp.eq.s32.totalorder %v3400_v31, 0 }
 0x233   :  { %v3323_v17 = vadd.f32 %v3322_v10, %v3321_v47  ;;  %v3346_v41 = vrot.slane %v3345_v34, 1 }
 0x235   :  { %v3324_v49 = vmul.f32 0.013888889, %v3323_v17  ;;  %v3347_v32 = vadd.f32 %v3346_v41, %v3345_v34  ;;  %3486 = vrot.lane.b32.xlu1 %v6287_v42, %s4693_s0  ;;  %3484 = vrot.lane.b32.xlu0 %v6280_v27, %s4693_s0  ;;  %v3401_v34 = vld [vmem:[%s6408_s2 + $0x18] sm:$0xff] }
 0x236   :  { %vm3428_vm9 = vcmp.eq.s32.totalorder %v3401_v34, 2  ;;  %vm3419_vm10 = vcmp.eq.s32.totalorder %v3401_v34, 1  ;;  %vm3410_vm11 = vcmp.eq.s32.totalorder %v3401_v34, 0 }
 0x237   :  { %v3348_v63 = vmul.f32 0.013888889, %v3347_v32  ;;  %v3349_v26 = vmul.f32 %v3324_v49, %v3324_v49 }
 0x239   :  { %v3350_v14 = vsub.f32 %v3348_v63, %v3349_v26  ;;  %3520 = vrot.lane.b32.xlu1 %v6280_v27, %s4695_s13  ;;  %3459 = vrot.lane.b32.xlu0 %v6287_v42, %s4694_s12 }
 0x23b   :  { %v3351_v57 = vmax.f32 %v3350_v14, 0.0 }
 0x23d   :  { %v3353_v40 = vadd.f32 1e-05, %v3351_v57  ;;  %3522 = vrot.lane.b32.xlu0 %v6287_v42, %s4695_s13 }
 0x23f   :  { %4673 = vrsqrt.f32 %v3353_v40 }
 0x24c   :  { %v4674_v25 = vpop.eup %4673 }
 0x24d   :  { %v3355_v33 = vmul.f32 %v4674_v25, %v3352_v53 }
 0x24f   :  { %v3357_v24 = vmul.f32 %v3355_v33, %v3324_v49  ;;  %v3363_v60 = vrot.slane %v3355_v33, %v3362_v16 }
 0x251   :  { %v3358_v15 = vsub.f32 %v3356_v56, %v3357_v24  ;;  %v3365_v62 = vmul.f32 %v3363_v60, %v6164_v8  ;;  %v3366_v29 = vmul.f32 %v3363_v60, %v6172_v55  ;;  %v3368_v4 = vmul.f32 %v3363_v60, %v6200_v51 }
 0x252   :  { %v3369_v44 = vmul.f32 %v3363_v60, %v6211_v2  ;;  %v3370_v37 = vmul.f32 %v3363_v60, %v6223_v35  ;;  %v3371_v7 = vmul.f32 %v3363_v60, %v6234_v6  ;;  %v3367_v45 = vmul.f32 %v3363_v60, %v6184_v3 }
 0x253   :  { %v3378_v38 = vrot.slane %v3358_v15, %v3362_v16  ;;  %v3372_v43 = vmul.f32 %v3363_v60, %v6247_v28  ;;  %v3373_v58 = vmul.f32 %v3363_v60, %v6259_v12  ;;  %v3398_v28 = vld [vmem:[%s6408_s2] sm:$0xff] }
 0x254   :  { %vm3425_vm0 = vcmp.eq.s32.totalorder %v3398_v28, 2  ;;  %vm3416_vm1 = vcmp.eq.s32.totalorder %v3398_v28, 1  ;;  %vm3407_vm2 = vcmp.eq.s32.totalorder %v3398_v28, 0 }
 0x255   :  { %v6314_v0 = vadd.f32 %v3378_v38, %v3365_v62  ;;  %v6316_v8 = vadd.f32 %v3378_v38, %v3366_v29  ;;  %v6318_v55 = vadd.f32 %v3378_v38, %v3367_v45  ;;  %v6320_v51 = vadd.f32 %v3378_v38, %v3368_v4 }
 0x256   :  { %v6322_v2 = vadd.f32 %v3378_v38, %v3369_v44  ;;  %v6324_v35 = vadd.f32 %v3378_v38, %v3370_v37  ;;  %v6326_v6 = vadd.f32 %v3378_v38, %v3371_v7  ;;  %v6328_v21 = vadd.f32 %v3378_v38, %v3372_v43  ;;  %v3404_v37 = vld [vmem:[%s6408_s2 + $0x30] sm:$0xff] }
 0x257   :  { %v6330_v3 = vadd.f32 %v3378_v38, %v3373_v58 }
 0x27b   :  { %v3471_v12 = vpop.permute.xlu1 %3470  ;;  %v3444_v11 = vpop.permute.xlu0 %3443 }
 0x27c   :  { %v3497_v9 = vsel %vm3425_vm0, %v3444_v11, %v3471_v12 }
 0x27f   :  { %v3509_v52 = vpop.permute.xlu1 %3508  ;;  %v3507_v18 = vpop.permute.xlu0 %3506 }
 0x280   :  { %v3533_v59 = vsel %vm3416_vm1, %v3507_v18, %v3497_v9  ;;  %v3405_v9 = vld [vmem:[%s6408_s2 + $0x38] sm:$0xff] }
 0x281   :  { %v3542_v22 = vsel %vm3407_vm2, %v6169_v46, %v3533_v59  ;;  %vm3431_vm2 = vcmp.eq.s32.totalorder %v3404_v37, 2  ;;  %v3406_v59 = vld [vmem:[%s6408_s2 + $0x40] sm:$0xff] }
 0x282   :  { %4675 = vtanh.f32 %v3542_v22 }
 0x283   :  { %v3448_v1 = vpop.permute.xlu1 %3447  ;;  %v3446_v5 = vpop.permute.xlu0 %3445 }
 0x287   :  { %v3475_v13 = vpop.permute.xlu1 %3474  ;;  %v3473_v47 = vpop.permute.xlu0 %3472 }
 0x288   :  { %v3498_v39 = vsel %vm3426_vm3, %v3446_v5, %v3473_v47  ;;  %v3499_v17 = vsel %vm3427_vm6, %v3448_v1, %v3475_v13  ;;  %vm3422_vm3 = vcmp.eq.s32.totalorder %v3404_v37, 1  ;;  %vm3423_vm6 = vcmp.eq.s32.totalorder %v3405_v9, 1 }
 0x289   :  { %v3534_v10 = vsel %vm3417_vm4, %v3509_v52, %v3498_v39  ;;  %vm3413_vm4 = vcmp.eq.s32.totalorder %v3404_v37, 0 }
 0x28a   :  { %v3543_v46 = vsel %vm3408_vm5, %v6179_v23, %v3534_v10  ;;  %vm3432_vm5 = vcmp.eq.s32.totalorder %v3405_v9, 2 }
 0x28b   :  { %4677 = vtanh.f32 %v3543_v46  ;;  %v3450_v41 = vpop.permute.xlu1 %3449  ;;  %v3511_v49 = vpop.permute.xlu0 %3510 }
 0x28c   :  { %v3535_v32 = vsel %vm3418_vm7, %v3511_v49, %v3499_v17  ;;  %vm3414_vm7 = vcmp.eq.s32.totalorder %v3405_v9, 0 }
 0x28d   :  { %v3544_v63 = vsel %vm3409_vm8, %v6196_v61, %v3535_v32  ;;  %v3403_v61 = vld [vmem:[%s6408_s2 + $0x28] sm:$0xff]  ;;  %vm3433_vm8 = vcmp.eq.s32.totalorder %v3406_v59, 2  ;;  %v3390_v32 = vmax.f32 %v6316_v8, 0.0  ;;  %v3393_v8 = vmax.f32 %v6322_v2, 0.0 }
 0x28e   :  { %4679 = vtanh.f32 %v3544_v63  ;;  %vm3430_vm15 = vcmp.eq.s32.totalorder %v3403_v61, 2  ;;  %vm3421_vm0 = vcmp.eq.s32.totalorder %v3403_v61, 1  ;;  %vm3412_vm1 = vcmp.eq.s32.totalorder %v3403_v61, 0 }
 0x28f   :  { %v4676_v26 = vpop.eup %4675  ;;  %v3513_v14 = vpop.permute.xlu1 %3512  ;;  %v3396_v2 = vmax.f32 %v6328_v21, 0.0 }
 0x290   :  { %v3477_v57 = vpop.permute.xlu0 %3476  ;;  %3562 = vperm.xlu1 %4051, %v4676_v26  }
 0x291   :  { %v3500_v23 = vsel %vm3428_vm9, %v3450_v41, %v3477_v57  ;;  %vm3424_vm9 = vcmp.eq.s32.totalorder %v3406_v59, 1  ;;  %v3389_v41 = vmax.f32 %v6314_v0, 0.0  ;;  %v3392_v0 = vmax.f32 %v6320_v51, 0.0 }
 0x292   :  { %v3536_v40 = vsel %vm3419_vm10, %v3513_v14, %v3500_v23  ;;  %vm3415_vm10 = vcmp.eq.s32.totalorder %v3406_v59, 0  ;;  %v3395_v51 = vmax.f32 %v6326_v6, 0.0 }
 0x293   :  { %v3545_v19 = vsel %vm3410_vm11, %v6217_v36, %v3536_v40  ;;  %v3479_v53 = vpop.permute.xlu1 %3478 }
 0x294   :  { %4681 = vtanh.f32 %v3545_v19  ;;  %v3452_v16 = vpop.permute.xlu0 %3451  ;;  %v3394_v19 = vmax.f32 %v6324_v35, 0.0  ;;  %v3397_v35 = vmax.f32 %v6330_v3, 0.0 }
 0x295   :  { %v3501_v25 = vsel %vm3429_vm12, %v3452_v16, %v3479_v53 }
 0x297   :  { %v3454_v33 = vpop.permute.xlu1 %3453 }
 0x298   :  { %v3515_v56 = vpop.permute.xlu0 %3514  ;;  %v4678_v24 = vpop.eup %4677 }
 0x299   :  { %v3537_v60 = vsel %vm3420_vm13, %v3515_v56, %v3501_v25  ;;  %3567 = vperm.xlu0 %4052, %v4678_v24  }
 0x29a   :  { %v3546_v15 = vsel %vm3411_vm14, %v6240_v20, %v3537_v60 }
 0x29b   :  { %4683 = vtanh.f32 %v3546_v15  ;;  %v4680_v36 = vpop.eup %4679  ;;  %v3517_v62 = vpop.permute.xlu1 %3516 }
 0x29c   :  { %v3481_v29 = vpop.permute.xlu0 %3480  ;;  %3572 = vperm.xlu1 %4051, %v4680_v36  }
 0x29d   :  { %v3502_v4 = vsel %vm3430_vm15, %v3454_v33, %v3481_v29 }
 0x29e   :  { %v3538_v44 = vsel %vm3421_vm0, %v3517_v62, %v3502_v4 }
 0x29f   :  { %v3547_v7 = vsel %vm3412_vm1, %v6253_v30, %v3538_v44  ;;  %v3483_v38 = vpop.permute.xlu1 %3482 }
 0x2a0   :  { %4685 = vtanh.f32 %v3547_v7  ;;  %v3456_v20 = vpop.permute.xlu0 %3455 }
 0x2a1   :  { %v4682_v45 = vpop.eup %4681  ;;  %v3503_v43 = vsel %vm3431_vm2, %v3456_v20, %v3483_v38 }
 0x2a2   :  { %3577 = vperm.xlu1 %4051, %v4682_v45  }
 0x2a3   :  { %v3458_v58 = vpop.permute.xlu1 %3457 }
 0x2a4   :  { %v3519_v28 = vpop.permute.xlu0 %3518 }
 0x2a5   :  { %v3539_v12 = vsel %vm3422_vm3, %v3519_v28, %v3503_v43 }
 0x2a6   :  { %v3548_v11 = vsel %vm3413_vm4, %v6273_v54, %v3539_v12 }
 0x2a7   :  { %4687 = vtanh.f32 %v3548_v11  ;;  %v3487_v52 = vpop.permute.xlu1 %3486 }
 0x2a8   :  { %v4684_v30 = vpop.eup %4683  ;;  %v3485_v18 = vpop.permute.xlu0 %3484 }
 0x2a9   :  { %3582 = vperm.xlu0 %4052, %v4684_v30   ;;  %v3504_v22 = vsel %vm3432_vm5, %v3458_v58, %v3485_v18 }
 0x2ab   :  { %v3521_v50 = vpop.permute.xlu1 %3520 }
 0x2ac   :  { %v3460_v1 = vpop.permute.xlu0 %3459  ;;  %v3540_v5 = vsel %vm3423_vm6, %v3521_v50, %v3504_v22 }
 0x2ad   :  { %v4686_v54 = vpop.eup %4685  ;;  %v3549_v31 = vsel %vm3414_vm7, %v6280_v27, %v3540_v5  ;;  %v3505_v13 = vsel %vm3433_vm8, %v3460_v1, %v3487_v52 }
 0x2ae   :  { %3587 = vperm.xlu1 %4051, %v4686_v54   ;;  %4689 = vtanh.f32 %v3549_v31 }
 0x2b0   :  { %v3523_v47 = vpop.permute.xlu0 %3522 }
 0x2b1   :  { %v3541_v39 = vsel %vm3424_vm9, %v3523_v47, %v3505_v13 }
 0x2b2   :  { %v3550_v10 = vsel %vm3415_vm10, %v6287_v42, %v3541_v39  ;;  %v3391_v42 = vmax.f32 %v6318_v55, 0.0 }
 0x2b3   :  { %4691 = vtanh.f32 %v3550_v10 }
 0x2b4   :  { %v4688_v46 = vpop.eup %4687 }
 0x2b5   :  { %3592 = vperm.xlu0 %4052, %v4688_v46  }
 0x2bb   :  { %v4690_v34 = vpop.eup %4689 }
 0x2bc   :  { %3597 = vperm.xlu1 %4051, %v4690_v34  }
 0x2c0   :  { %v4692_v17 = vpop.eup %4691 }
 0x2c1   :  { %3602 = vperm.xlu0 %4052, %v4692_v17  }
 0x30b   :  { %v3563_v49 = vpop.permute.xlu1 %3562 }
 0x30c   :  { %v3605_v27 = vadd.f32 %v3563_v49, %v3389_v41 }
 0x30e   :  { %3614 = vst [vmem:[%s6409_s5] sm:$0xff] %v3605_v27 }
 0x314   :  { %v3568_v63 = vpop.permute.xlu0 %3567 }
 0x315   :  { %v3606_v26 = vadd.f32 %v3568_v63, %v3390_v32 }
 0x317   :  { %3615 = vst [vmem:[%s6409_s5 + $0x8] sm:$0xff] %v3606_v26  ;;  %v3573_v14 = vpop.permute.xlu1 %3572 }
 0x318   :  { %v3607_v57 = vadd.f32 %v3573_v14, %v3391_v42 }
 0x31a   :  { %3616 = vst [vmem:[%s6409_s5 + $0x10] sm:$0xff] %v3607_v57 }
 0x31d   :  { %v3578_v23 = vpop.permute.xlu1 %3577 }
 0x31e   :  { %v3608_v40 = vadd.f32 %v3578_v23, %v3392_v0 }
 0x320   :  { %3617 = vst [vmem:[%s6409_s5 + $0x18] sm:$0xff] %v3608_v40 }
 0x324   :  { %v3583_v55 = vpop.permute.xlu0 %3582 }
 0x325   :  { %v3609_v48 = vadd.f32 %v3583_v55, %v3393_v8 }
 0x327   :  { %3618 = vst [vmem:[%s6409_s5 + $0x20] sm:$0xff] %v3609_v48 }
 0x329   :  { %v3588_v53 = vpop.permute.xlu1 %3587 }
 0x32a   :  { %v3610_v16 = vadd.f32 %v3588_v53, %v3394_v19 }
 0x32c   :  { %3619 = vst [vmem:[%s6409_s5 + $0x28] sm:$0xff] %v3610_v16 }
 0x330   :  { %v3593_v61 = vpop.permute.xlu0 %3592 }
 0x331   :  { %v3611_v25 = vadd.f32 %v3593_v61, %v3395_v51 }
 0x333   :  { %3620 = vst [vmem:[%s6409_s5 + $0x30] sm:$0xff] %v3611_v25 }
 0x337   :  { %v3598_v33 = vpop.permute.xlu1 %3597 }
 0x338   :  { %v3612_v56 = vadd.f32 %v3598_v33, %v3396_v2 }
 0x33a   :  { %3621 = vst [vmem:[%s6409_s5 + $0x38] sm:$0xff] %v3612_v56 }
 0x33c   :  { %v3603_v24 = vpop.permute.xlu0 %3602 }
 0x33d   :  { %v3613_v60 = vadd.f32 %v3603_v24, %v3397_v35 }
 0x33f   :  { %3622 = vst [vmem:[%s6409_s5 + $0x40] sm:$0xff] %v3613_v60 }

</bundles_post_ra>
